<compile_context>
chip_gen: v7x
topology: tpu7x:2x2x1
jax: 0.10.0
libtpu: 0.0.40
codegen_flags: <defaults>
</compile_context>

<pallas_src>
import functools

import jax
import jax.numpy as jnp
import numpy as np
from jax.experimental import pallas as pl
from jax.experimental.pallas import tpu as pltpu

# ---- small, module-consistent config ----
B, S, H = 2, 8, 32          # batch, seq, hidden_size
NH = 4                      # num_attention_heads
HD = H // NH                # attention_head_size
I = 64                      # intermediate_size
L = 2                       # num_hidden_layers
EPS = 1e-5                  # layer_norm_eps


def _layernorm(x, g, b):
    mu = jnp.mean(x, axis=-1, keepdims=True)
    var = jnp.mean((x - mu) ** 2, axis=-1, keepdims=True)
    return (x - mu) * jax.lax.rsqrt(var + EPS) * g + b


# ------------------------------------------------------------------
# Fused encoder kernel: grid=(L,), hidden state resident in out_ref VMEM
# ------------------------------------------------------------------
def encoder_kernel(h0_ref, cossin_ref, gfbf_ref,
                   wqkv_ref, wo_ref, wi_ref, w2_ref, vec_ref,
                   out_ref):
    dot = functools.partial(jnp.dot, preferred_element_type=jnp.float32)
    lyr = pl.program_id(0)

    # Initialize the resident hidden state from the input on the first layer.
    @pl.when(lyr == 0)
    def _():
        out_ref[...] = h0_ref[...]

    h = out_ref[...]                                  # (B*S, H)

    # Packed per-layer vectors: rows of a single (8, 5H) block.
    vec = vec_ref[...]
    g1, b1 = vec[0:1, :H], vec[1:2, :H]
    bo = vec[2:3, :H]
    g2, b2 = vec[3:4, :H], vec[4:5, :H]
    b2b = vec[5:6, :H]
    bi = vec[6:7, :I]
    b_qkv = vec[7:8, :]                               # (1, 5H)

    # RoPE tables: (2S, H) head-tiled on host; broadcast over batch here
    # (sublane concat, hoisted outside the head loop).
    cs = cossin_ref[...]
    cos = jnp.concatenate([cs[0:S, :]] * B, axis=0)   # (B*S, H)
    sin = jnp.concatenate([cs[S:2 * S, :]] * B, axis=0)

    # ---- attention block (pre-LN) ----
    hln = _layernorm(h, g1, b1)

    # One fused projection: [wq*scale | rot(wq*scale) | wk | rot(wk) | wv].
    # Rotate_half permutation + head_dim**-0.5 scale are folded on the host,
    # so RoPE is just dense VPU multiplies below.
    qkv = dot(hln, wqkv_ref[...]) + b_qkv             # (B*S, 5H)
    q = qkv[:, 0 * H:1 * H] * cos + qkv[:, 1 * H:2 * H] * sin
    k = qkv[:, 2 * H:3 * H] * cos + qkv[:, 3 * H:4 * H] * sin
    v = qkv[:, 4 * H:5 * H]

    # Fold output-projection bias + residual into one add (overlaps MXU work).
    resid = h + bo

    # Attention: per (batch, head), statically unrolled at this small size.
    # Head contexts are lane-concatenated per batch, batches sublane-
    # concatenated, so the output projection is a single matmul.
    batch_ctx = []
    for b in range(B):
        r0 = b * S
        head_ctx = []
        for hh in range(NH):
            c0 = hh * HD
            qb = q[r0:r0 + S, c0:c0 + HD]             # (S, HD)
            kb = k[r0:r0 + S, c0:c0 + HD]
            vb = v[r0:r0 + S, c0:c0 + HD]
            scores = jax.lax.dot_general(
                qb, kb, (((1,), (1,)), ((), ())),
                preferred_element_type=jnp.float32)   # (S, S)
            scores = scores - jnp.max(scores, axis=-1, keepdims=True)
            e = jnp.exp(scores)
            denom = jnp.sum(e, axis=-1, keepdims=True)
            probs = e * pl.reciprocal(denom, approx=True)
            head_ctx.append(dot(probs, vb))           # (S, HD)
        batch_ctx.append(jnp.concatenate(head_ctx, axis=-1))   # (S, H)
    ctx_all = jnp.concatenate(batch_ctx, axis=0)      # (B*S, H)

    attn_out = dot(ctx_all, wo_ref[...]) + resid      # single output proj

    # ---- feed-forward block (pre-LN) ----
    aln = _layernorm(attn_out, g2, b2)
    inter = dot(aln, wi_ref[...]) + bi
    inter = 0.5 * inter * (1.0 + jax.lax.erf(inter * (2.0 ** -0.5)))  # exact GELU
    new_h = dot(inter, w2_ref[...]) + b2b + attn_out

    last = pl.num_programs(0) - 1

    @pl.when(lyr < last)
    def _():
        out_ref[...] = new_h

    @pl.when(lyr == last)
    def _():
        # emb_layer_norm_after fused into the final grid step.
        gfbf = gfbf_ref[...]
        out_ref[...] = _layernorm(new_h, gfbf[0:1, :], gfbf[1:2, :])


# ------------------------------------------------------------------
# Wrapper
# ------------------------------------------------------------------
def lmbase_encoder_forward(hidden_states, stacked_params, final_ln_params, cossin):
    """hidden_states: (B, S, H) float32 -> last_hidden_state (B, S, H)."""
    num_layers = int(stacked_params[0].shape[0])
    h2d = hidden_states.reshape(B * S, H)
    gf, bf = final_ln_params
    gfbf = jnp.concatenate([gf, bf], axis=0)          # (2, H)

    fixed_inputs = (h2d, cossin, gfbf)
    fixed_specs = [
        pl.BlockSpec((B * S, H), lambda l: (0, 0)),   # h0
        pl.BlockSpec((2 * S, H), lambda l: (0, 0)),   # cos/sin (merged)
        pl.BlockSpec((2, H), lambda l: (0, 0)),       # final LN gamma/beta
    ]
    stacked_specs = [
        pl.BlockSpec((None,) + tuple(p.shape[1:]), lambda l: (l, 0, 0))
        for p in stacked_params
    ]

    out2d = pl.pallas_call(
        encoder_kernel,
        out_shape=jax.ShapeDtypeStruct((B * S, H), jnp.float32),
        grid=(num_layers,),
        in_specs=fixed_specs + stacked_specs,
        out_specs=pl.BlockSpec((B * S, H), lambda l: (0, 0)),
        compiler_params=pltpu.CompilerParams(
            dimension_semantics=("arbitrary",)),      # sequential layer dep
    )(*fixed_inputs, *stacked_params)
    return out2d.reshape(B, S, H)


# ------------------------------------------------------------------
# Deterministic parameter init + host-side prep + pure-JAX reference
# ------------------------------------------------------------------
def make_linear(key, din, dout):
    kw, kb = jax.random.split(key)
    # torch nn.Linear stores weight as (dout, din); we keep (din, dout) = W.T
    w = (jax.random.normal(kw, (dout, din), jnp.float32) * 0.02).T
    b = jax.random.normal(kb, (1, dout), jnp.float32) * 0.02
    return w, b


def make_layer_params(key):
    keys = jax.random.split(key, 6)
    g1 = jnp.ones((1, H), jnp.float32)
    b1 = jnp.zeros((1, H), jnp.float32)
    wq, bq = make_linear(keys[0], H, H)
    wk, bk = make_linear(keys[1], H, H)
    wv, bv = make_linear(keys[2], H, H)
    wo, bo = make_linear(keys[3], H, H)
    g2 = jnp.ones((1, H), jnp.float32)
    b2 = jnp.zeros((1, H), jnp.float32)
    wi, bi = make_linear(keys[4], H, I)
    w2, b2b = make_linear(keys[5], I, H)
    return (g1, b1, wq, bq, wk, bk, wv, bv, wo, bo, g2, b2, wi, bi, w2, b2b)


def _rotate_half_cols(w):
    """Apply rotate_half to the output-feature (last) axis, per head. Exact
    column permutation + sign flip, done once on the host:
    hln @ rotate_half_cols(W) + rotate_half_cols(b) == rotate_half(hln @ W + b)."""
    lead = w.shape[0]
    w3 = w.reshape(lead, NH, HD)
    w1, w2h = w3[..., :HD // 2], w3[..., HD // 2:]
    return jnp.concatenate([-w2h, w1], axis=-1).reshape(w.shape)


def prepare_stacked_params(layer_params):
    """Host-side one-time prep: fold HD**-0.5 into the query projection, fold
    rotate_half into pre-rotated weight/bias copies, fuse the five QKV
    projections into one (H, 5H) matmul, pack all small vectors into one
    (8, 5H) block per layer, and stack everything along a leading layer axis."""
    scale = HD ** -0.5
    wqkv_l, wo_l, wi_l, w2_l, vec_l = [], [], [], [], []
    for p in layer_params:
        g1, b1, wq, bq, wk, bk, wv, bv, wo, bo, g2, b2, wi, bi, w2, b2b = p
        wq_s, bq_s = wq * scale, bq * scale
        w_qkv = jnp.concatenate(
            [wq_s, _rotate_half_cols(wq_s), wk, _rotate_half_cols(wk), wv],
            axis=-1)                                          # (H, 5H)
        b_qkv = jnp.concatenate(
            [bq_s, _rotate_half_cols(bq_s), bk, _rotate_half_cols(bk), bv],
            axis=-1)                                          # (1, 5H)
        vec = jnp.zeros((8, 5 * H), jnp.float32)
        vec = (vec.at[0, :H].set(g1[0]).at[1, :H].set(b1[0]).at[2, :H].set(bo[0])
                  .at[3, :H].set(g2[0]).at[4, :H].set(b2[0]).at[5, :H].set(b2b[0])
                  .at[6, :I].set(bi[0]).at[7, :].set(b_qkv[0]))
        wqkv_l.append(w_qkv)
        wo_l.append(wo)
        wi_l.append(wi)
        w2_l.append(w2)
        vec_l.append(vec)
    return (jnp.stack(wqkv_l), jnp.stack(wo_l), jnp.stack(wi_l),
            jnp.stack(w2_l), jnp.stack(vec_l))


def rope_tables():
    inv_freq = 1.0 / (10000.0 ** (jnp.arange(0, HD, 2, dtype=jnp.float32) / HD))
    t = jnp.arange(S, dtype=jnp.float32)
    freqs = jnp.outer(t, inv_freq)                      # (S, HD/2)
    emb = jnp.concatenate([freqs, freqs], axis=-1)      # (S, HD)
    cos, sin = jnp.cos(emb), jnp.sin(emb)
    # tile across heads only (batch broadcast happens in-kernel); stack cos on
    # top of sin -> one (2S, H) input instead of two (B*S, H) tables.
    cos_h = jnp.tile(cos, (1, NH))                      # (S, H)
    sin_h = jnp.tile(sin, (1, NH))
    cossin = jnp.concatenate([cos_h, sin_h], axis=0)    # (2S, H)
    return cos, sin, cossin


def reference_forward(x, layer_params, final_ln_params, cos, sin):
    hi = jax.lax.Precision.HIGHEST

    def ln3(t, g, b):
        mu = jnp.mean(t, axis=-1, keepdims=True)
        var = jnp.mean((t - mu) ** 2, axis=-1, keepdims=True)
        return (t - mu) * jax.lax.rsqrt(var + EPS) * g + b

    def rot_half(y):
        y1, y2 = y[..., :HD // 2], y[..., HD // 2:]
        return jnp.concatenate([-y2, y1], axis=-1)

    for p in layer_params:
        g1, b1, wq, bq, wk, bk, wv, bv, wo, bo, g2, b2, wi, bi, w2, b2b = p
        hln = ln3(x, g1[0], b1[0])

        def proj(w, b):
            t = jnp.einsum('bsh,ho->bso', hln, w, precision=hi) + b[0]
            return t.reshape(B, S, NH, HD).transpose(0, 2, 1, 3)

        q = proj(wq, bq) * (HD ** -0.5)
        k = proj(wk, bk)
        v = proj(wv, bv)
        q = q * cos + rot_half(q) * sin
        k = k * cos + rot_half(k) * sin
        scores = jnp.einsum('bhqd,bhkd->bhqk', q, k, precision=hi)
        probs = jax.nn.softmax(scores, axis=-1)
        ctx = jnp.einsum('bhqk,bhkd->bhqd', probs, v, precision=hi)
        ctx = ctx.transpose(0, 2, 1, 3).reshape(B, S, H)
        attn = jnp.einsum('bsh,ho->bso', ctx, wo, precision=hi) + bo[0] + x
        aln = ln3(attn, g2[0], b2[0])
        inter = jnp.einsum('bsh,hi->bsi', aln, wi, precision=hi) + bi[0]
        inter = 0.5 * inter * (1.0 + jax.lax.erf(inter * (2.0 ** -0.5)))
        x = jnp.einsum('bsi,ih->bsh', inter, w2, precision=hi) + b2b[0] + attn

    g, b = final_ln_params
    return ln3(x, g[0], b[0])


# ------------------------------------------------------------------
if __name__ == "__main__":
    key = jax.random.PRNGKey(0)
    k_in, *k_layers = jax.random.split(key, L + 1)

    hidden_states = jax.random.normal(k_in, (B, S, H), jnp.float32)
    layer_params = [make_layer_params(k) for k in k_layers]
    final_ln_params = (jnp.ones((1, H), jnp.float32), jnp.zeros((1, H), jnp.float32))

    cos, sin, cossin = rope_tables()
    stacked_params = prepare_stacked_params(layer_params)

    out = lmbase_encoder_forward(hidden_states, stacked_params, final_ln_params,
                                 cossin)
    out = jax.block_until_ready(out)

    ref = reference_forward(hidden_states, layer_params, final_ln_params, cos, sin)
    ref = jax.block_until_ready(ref)

    np.testing.assert_allclose(np.asarray(out), np.asarray(ref),
                               rtol=2e-3, atol=2e-3)
    print("KERNEL_OK")
</pallas_src>

<mosaic_0001>
module attributes {stable_mosaic.version = 11 : i64} {
  func.func @encoder_kernel(%arg0: i32, %arg1: memref<16x32xf32, #tpu.memory_space<vmem>>, %arg2: memref<16x32xf32, #tpu.memory_space<vmem>>, %arg3: memref<2x32xf32, #tpu.memory_space<vmem>>, %arg4: memref<1x32x160xf32, #tpu.memory_space<vmem>>, %arg5: memref<1x32x32xf32, #tpu.memory_space<vmem>>, %arg6: memref<1x32x64xf32, #tpu.memory_space<vmem>>, %arg7: memref<1x64x32xf32, #tpu.memory_space<vmem>>, %arg8: memref<1x8x160xf32, #tpu.memory_space<vmem>>, %arg9: memref<16x32xf32, #tpu.memory_space<vmem>>) attributes {dimension_semantics = [#tpu.dimension_semantics<arbitrary>], iteration_bounds = array<i64: 2>, scalar_prefetch = 0 : i64, scratch_operands = 0 : i64, tpu.core_type = #tpu.core_type<tc>, window_params = [{pipeline_mode = #tpu.pipeline_mode<synchronous>, transform_indices = @transform_0, window_bounds = array<i64: 16, 32>}, {pipeline_mode = #tpu.pipeline_mode<synchronous>, transform_indices = @transform_1, window_bounds = array<i64: 16, 32>}, {pipeline_mode = #tpu.pipeline_mode<synchronous>, transform_indices = @transform_2, window_bounds = array<i64: 2, 32>}, {transform_indices = @transform_3, window_bounds = array<i64: 1, 32, 160>}, {transform_indices = @transform_4, window_bounds = array<i64: 1, 32, 32>}, {transform_indices = @transform_5, window_bounds = array<i64: 1, 32, 64>}, {transform_indices = @transform_6, window_bounds = array<i64: 1, 64, 32>}, {transform_indices = @transform_7, window_bounds = array<i64: 1, 8, 160>}, {pipeline_mode = #tpu.pipeline_mode<synchronous>, transform_indices = @transform_8, window_bounds = array<i64: 16, 32>}]} {
    %c0_i32 = arith.constant 0 : i32
    %0 = arith.cmpi eq, %arg0, %c0_i32 : i32
    %1 = arith.extui %0 : i1 to i32
    %c0_i32_0 = arith.constant 0 : i32
    %2 = arith.cmpi ne, %1, %c0_i32_0 : i32
    scf.if %2 {
      %c0_70 = arith.constant 0 : index
      %c0_71 = arith.constant 0 : index
      %233 = vector.load %arg1[%c0_70, %c0_71] : memref<16x32xf32, #tpu.memory_space<vmem>>, vector<16x32xf32>
      %c0_72 = arith.constant 0 : index
      %c0_73 = arith.constant 0 : index
      %234 = vector.load %arg9[%c0_72, %c0_73] : memref<16x32xf32, #tpu.memory_space<vmem>>, vector<16x32xf32>
      tpu.vector_store %arg9[%c0_72, %c0_73], %233 {strides = array<i32>} : memref<16x32xf32, #tpu.memory_space<vmem>>, vector<16x32xf32>,
    } else {
    }
    %c0 = arith.constant 0 : index
    %c0_1 = arith.constant 0 : index
    %3 = vector.load %arg9[%c0, %c0_1] : memref<16x32xf32, #tpu.memory_space<vmem>>, vector<16x32xf32>
    %c0_2 = arith.constant 0 : index
    %c0_3 = arith.constant 0 : index
    %c0_4 = arith.constant 0 : index
    %4 = vector.load %arg8[%c0_2, %c0_3, %c0_4] : memref<1x8x160xf32, #tpu.memory_space<vmem>>, vector<1x8x160xf32>
    %5 = vector.shape_cast %4 : vector<1x8x160xf32> to vector<8x160xf32>
    %6 = vector.extract_strided_slice %5 {offsets = [0, 0], sizes = [1, 32], strides = [1, 1]} : vector<8x160xf32> to vector<1x32xf32>
    %7 = vector.extract_strided_slice %5 {offsets = [1, 0], sizes = [1, 32], strides = [1, 1]} : vector<8x160xf32> to vector<1x32xf32>
    %8 = vector.extract_strided_slice %5 {offsets = [2, 0], sizes = [1, 32], strides = [1, 1]} : vector<8x160xf32> to vector<1x32xf32>
    %9 = vector.extract_strided_slice %5 {offsets = [3, 0], sizes = [1, 32], strides = [1, 1]} : vector<8x160xf32> to vector<1x32xf32>
    %10 = vector.extract_strided_slice %5 {offsets = [4, 0], sizes = [1, 32], strides = [1, 1]} : vector<8x160xf32> to vector<1x32xf32>
    %11 = vector.extract_strided_slice %5 {offsets = [5, 0], sizes = [1, 32], strides = [1, 1]} : vector<8x160xf32> to vector<1x32xf32>
    %12 = vector.extract_strided_slice %5 {offsets = [6, 0], sizes = [1, 64], strides = [1, 1]} : vector<8x160xf32> to vector<1x64xf32>
    %13 = vector.extract_strided_slice %5 {offsets = [7, 0], sizes = [1, 160], strides = [1, 1]} : vector<8x160xf32> to vector<1x160xf32>
    %c0_5 = arith.constant 0 : index
    %c0_6 = arith.constant 0 : index
    %14 = vector.load %arg2[%c0_5, %c0_6] : memref<16x32xf32, #tpu.memory_space<vmem>>, vector<16x32xf32>
    %15 = vector.extract_strided_slice %14 {offsets = [0, 0], sizes = [8, 32], strides = [1, 1]} : vector<16x32xf32> to vector<8x32xf32>
    %16 = tpu.concatenate %15, %15 in 0 : vector<8x32xf32>, vector<8x32xf32> -> vector<16x32xf32>
    %17 = vector.extract_strided_slice %14 {offsets = [8, 0], sizes = [8, 32], strides = [1, 1]} : vector<16x32xf32> to vector<8x32xf32>
    %18 = tpu.concatenate %17, %17 in 0 : vector<8x32xf32>, vector<8x32xf32> -> vector<16x32xf32>
    %cst = arith.constant dense<0.000000e+00> : vector<16xf32>
    %19 = vector.multi_reduction <add>, %3, %cst [1] : vector<16x32xf32> to vector<16xf32>
    %20 = vector.shape_cast %19 : vector<16xf32> to vector<16x1xf32>
    %cst_7 = arith.constant 3.200000e+01 : f32
    %21 = vector.broadcast %cst_7 : f32 to vector<16x1xf32>
    %22 = arith.divf %20, %21 : vector<16x1xf32>
    %23 = vector.broadcast %22 : vector<16x1xf32> to vector<16x32xf32>
    %24 = arith.subf %3, %23 : vector<16x32xf32>
    %25 = arith.mulf %24, %24 : vector<16x32xf32>
    %cst_8 = arith.constant dense<0.000000e+00> : vector<16xf32>
    %26 = vector.multi_reduction <add>, %25, %cst_8 [1] : vector<16x32xf32> to vector<16xf32>
    %27 = vector.shape_cast %26 : vector<16xf32> to vector<16x1xf32>
    %cst_9 = arith.constant 3.200000e+01 : f32
    %28 = vector.broadcast %cst_9 : f32 to vector<16x1xf32>
    %29 = arith.divf %27, %28 : vector<16x1xf32>
    %30 = vector.broadcast %22 : vector<16x1xf32> to vector<16x32xf32>
    %31 = arith.subf %3, %30 : vector<16x32xf32>
    %cst_10 = arith.constant 9.99999974E-6 : f32
    %32 = vector.broadcast %cst_10 : f32 to vector<16x1xf32>
    %33 = arith.addf %29, %32 : vector<16x1xf32>
    %34 = math.rsqrt %33 : vector<16x1xf32>
    %35 = vector.broadcast %34 : vector<16x1xf32> to vector<16x32xf32>
    %36 = arith.mulf %31, %35 : vector<16x32xf32>
    %37 = vector.broadcast %6 : vector<1x32xf32> to vector<16x32xf32>
    %38 = arith.mulf %36, %37 : vector<16x32xf32>
    %39 = vector.broadcast %7 : vector<1x32xf32> to vector<16x32xf32>
    %40 = arith.addf %38, %39 : vector<16x32xf32>
    %c0_11 = arith.constant 0 : index
    %c0_12 = arith.constant 0 : index
    %c0_13 = arith.constant 0 : index
    %41 = vector.load %arg4[%c0_11, %c0_12, %c0_13] : memref<1x32x160xf32, #tpu.memory_space<vmem>>, vector<1x32x160xf32>
    %42 = vector.shape_cast %41 : vector<1x32x160xf32> to vector<32x160xf32>
    %cst_14 = arith.constant dense<0.000000e+00> : vector<16x160xf32>
    %43 = tpu.matmul %40, %42, %cst_14 {dimension_numbers = #tpu.dot_dimension_numbers<[1], [0], [0], [1], [0, 0, 1, 1], [], []>} : vector<16x32xf32>, vector<32x160xf32>, vector<16x160xf32> -> vector<16x160xf32>
    %44 = vector.broadcast %13 : vector<1x160xf32> to vector<16x160xf32>
    %45 = arith.addf %43, %44 : vector<16x160xf32>
    %46 = vector.extract_strided_slice %45 {offsets = [0, 0], sizes = [16, 32], strides = [1, 1]} : vector<16x160xf32> to vector<16x32xf32>
    %47 = arith.mulf %46, %16 : vector<16x32xf32>
    %48 = vector.extract_strided_slice %45 {offsets = [0, 32], sizes = [16, 32], strides = [1, 1]} : vector<16x160xf32> to vector<16x32xf32>
    %49 = arith.mulf %48, %18 : vector<16x32xf32>
    %50 = arith.addf %47, %49 : vector<16x32xf32>
    %51 = vector.extract_strided_slice %45 {offsets = [0, 64], sizes = [16, 32], strides = [1, 1]} : vector<16x160xf32> to vector<16x32xf32>
    %52 = arith.mulf %51, %16 : vector<16x32xf32>
    %53 = vector.extract_strided_slice %45 {offsets = [0, 96], sizes = [16, 32], strides = [1, 1]} : vector<16x160xf32> to vector<16x32xf32>
    %54 = arith.mulf %53, %18 : vector<16x32xf32>
    %55 = arith.addf %52, %54 : vector<16x32xf32>
    %56 = vector.extract_strided_slice %45 {offsets = [0, 128], sizes = [16, 32], strides = [1, 1]} : vector<16x160xf32> to vector<16x32xf32>
    %57 = vector.broadcast %8 : vector<1x32xf32> to vector<16x32xf32>
    %58 = arith.addf %3, %57 : vector<16x32xf32>
    %59 = vector.extract_strided_slice %50 {offsets = [0, 0], sizes = [8, 8], strides = [1, 1]} : vector<16x32xf32> to vector<8x8xf32>
    %60 = vector.extract_strided_slice %55 {offsets = [0, 0], sizes = [8, 8], strides = [1, 1]} : vector<16x32xf32> to vector<8x8xf32>
    %61 = vector.extract_strided_slice %56 {offsets = [0, 0], sizes = [8, 8], strides = [1, 1]} : vector<16x32xf32> to vector<8x8xf32>
    %cst_15 = arith.constant dense<0.000000e+00> : vector<8x8xf32>
    %62 = tpu.matmul %59, %60, %cst_15 {dimension_numbers = #tpu.dot_dimension_numbers<[1], [1], [0], [0], [0, 0, 1, 0], [], []>} : vector<8x8xf32>, vector<8x8xf32>, vector<8x8xf32> -> vector<8x8xf32>
    %cst_16 = arith.constant dense<0xFF800000> : vector<8xf32>
    %63 = vector.multi_reduction <maximumf>, %62, %cst_16 [1] : vector<8x8xf32> to vector<8xf32>
    %64 = vector.shape_cast %63 : vector<8xf32> to vector<8x1xf32>
    %65 = vector.broadcast %64 : vector<8x1xf32> to vector<8x8xf32>
    %66 = arith.subf %62, %65 : vector<8x8xf32>
    %67 = math.exp %66 : vector<8x8xf32>
    %cst_17 = arith.constant dense<0.000000e+00> : vector<8xf32>
    %68 = vector.multi_reduction <add>, %67, %cst_17 [1] : vector<8x8xf32> to vector<8xf32>
    %69 = vector.shape_cast %68 : vector<8xf32> to vector<8x1xf32>
    %70 = tpu.reciprocal %69 {approx = true} : vector<8x1xf32> -> vector<8x1xf32>
    %71 = vector.broadcast %70 : vector<8x1xf32> to vector<8x8xf32>
    %72 = arith.mulf %67, %71 : vector<8x8xf32>
    %cst_18 = arith.constant dense<0.000000e+00> : vector<8x8xf32>
    %73 = tpu.matmul %72, %61, %cst_18 {dimension_numbers = #tpu.dot_dimension_numbers<[1], [0], [0], [1], [0, 0, 1, 1], [], []>} : vector<8x8xf32>, vector<8x8xf32>, vector<8x8xf32> -> vector<8x8xf32>
    %74 = vector.extract_strided_slice %50 {offsets = [0, 8], sizes = [8, 8], strides = [1, 1]} : vector<16x32xf32> to vector<8x8xf32>
    %75 = vector.extract_strided_slice %55 {offsets = [0, 8], sizes = [8, 8], strides = [1, 1]} : vector<16x32xf32> to vector<8x8xf32>
    %76 = vector.extract_strided_slice %56 {offsets = [0, 8], sizes = [8, 8], strides = [1, 1]} : vector<16x32xf32> to vector<8x8xf32>
    %cst_19 = arith.constant dense<0.000000e+00> : vector<8x8xf32>
    %77 = tpu.matmul %74, %75, %cst_19 {dimension_numbers = #tpu.dot_dimension_numbers<[1], [1], [0], [0], [0, 0, 1, 0], [], []>} : vector<8x8xf32>, vector<8x8xf32>, vector<8x8xf32> -> vector<8x8xf32>
    %cst_20 = arith.constant dense<0xFF800000> : vector<8xf32>
    %78 = vector.multi_reduction <maximumf>, %77, %cst_20 [1] : vector<8x8xf32> to vector<8xf32>
    %79 = vector.shape_cast %78 : vector<8xf32> to vector<8x1xf32>
    %80 = vector.broadcast %79 : vector<8x1xf32> to vector<8x8xf32>
    %81 = arith.subf %77, %80 : vector<8x8xf32>
    %82 = math.exp %81 : vector<8x8xf32>
    %cst_21 = arith.constant dense<0.000000e+00> : vector<8xf32>
    %83 = vector.multi_reduction <add>, %82, %cst_21 [1] : vector<8x8xf32> to vector<8xf32>
    %84 = vector.shape_cast %83 : vector<8xf32> to vector<8x1xf32>
    %85 = tpu.reciprocal %84 {approx = true} : vector<8x1xf32> -> vector<8x1xf32>
    %86 = vector.broadcast %85 : vector<8x1xf32> to vector<8x8xf32>
    %87 = arith.mulf %82, %86 : vector<8x8xf32>
    %cst_22 = arith.constant dense<0.000000e+00> : vector<8x8xf32>
    %88 = tpu.matmul %87, %76, %cst_22 {dimension_numbers = #tpu.dot_dimension_numbers<[1], [0], [0], [1], [0, 0, 1, 1], [], []>} : vector<8x8xf32>, vector<8x8xf32>, vector<8x8xf32> -> vector<8x8xf32>
    %89 = vector.extract_strided_slice %50 {offsets = [0, 16], sizes = [8, 8], strides = [1, 1]} : vector<16x32xf32> to vector<8x8xf32>
    %90 = vector.extract_strided_slice %55 {offsets = [0, 16], sizes = [8, 8], strides = [1, 1]} : vector<16x32xf32> to vector<8x8xf32>
    %91 = vector.extract_strided_slice %56 {offsets = [0, 16], sizes = [8, 8], strides = [1, 1]} : vector<16x32xf32> to vector<8x8xf32>
    %cst_23 = arith.constant dense<0.000000e+00> : vector<8x8xf32>
    %92 = tpu.matmul %89, %90, %cst_23 {dimension_numbers = #tpu.dot_dimension_numbers<[1], [1], [0], [0], [0, 0, 1, 0], [], []>} : vector<8x8xf32>, vector<8x8xf32>, vector<8x8xf32> -> vector<8x8xf32>
    %cst_24 = arith.constant dense<0xFF800000> : vector<8xf32>
    %93 = vector.multi_reduction <maximumf>, %92, %cst_24 [1] : vector<8x8xf32> to vector<8xf32>
    %94 = vector.shape_cast %93 : vector<8xf32> to vector<8x1xf32>
    %95 = vector.broadcast %94 : vector<8x1xf32> to vector<8x8xf32>
    %96 = arith.subf %92, %95 : vector<8x8xf32>
    %97 = math.exp %96 : vector<8x8xf32>
    %cst_25 = arith.constant dense<0.000000e+00> : vector<8xf32>
    %98 = vector.multi_reduction <add>, %97, %cst_25 [1] : vector<8x8xf32> to vector<8xf32>
    %99 = vector.shape_cast %98 : vector<8xf32> to vector<8x1xf32>
    %100 = tpu.reciprocal %99 {approx = true} : vector<8x1xf32> -> vector<8x1xf32>
    %101 = vector.broadcast %100 : vector<8x1xf32> to vector<8x8xf32>
    %102 = arith.mulf %97, %101 : vector<8x8xf32>
    %cst_26 = arith.constant dense<0.000000e+00> : vector<8x8xf32>
    %103 = tpu.matmul %102, %91, %cst_26 {dimension_numbers = #tpu.dot_dimension_numbers<[1], [0], [0], [1], [0, 0, 1, 1], [], []>} : vector<8x8xf32>, vector<8x8xf32>, vector<8x8xf32> -> vector<8x8xf32>
    %104 = vector.extract_strided_slice %50 {offsets = [0, 24], sizes = [8, 8], strides = [1, 1]} : vector<16x32xf32> to vector<8x8xf32>
    %105 = vector.extract_strided_slice %55 {offsets = [0, 24], sizes = [8, 8], strides = [1, 1]} : vector<16x32xf32> to vector<8x8xf32>
    %106 = vector.extract_strided_slice %56 {offsets = [0, 24], sizes = [8, 8], strides = [1, 1]} : vector<16x32xf32> to vector<8x8xf32>
    %cst_27 = arith.constant dense<0.000000e+00> : vector<8x8xf32>
    %107 = tpu.matmul %104, %105, %cst_27 {dimension_numbers = #tpu.dot_dimension_numbers<[1], [1], [0], [0], [0, 0, 1, 0], [], []>} : vector<8x8xf32>, vector<8x8xf32>, vector<8x8xf32> -> vector<8x8xf32>
    %cst_28 = arith.constant dense<0xFF800000> : vector<8xf32>
    %108 = vector.multi_reduction <maximumf>, %107, %cst_28 [1] : vector<8x8xf32> to vector<8xf32>
    %109 = vector.shape_cast %108 : vector<8xf32> to vector<8x1xf32>
    %110 = vector.broadcast %109 : vector<8x1xf32> to vector<8x8xf32>
    %111 = arith.subf %107, %110 : vector<8x8xf32>
    %112 = math.exp %111 : vector<8x8xf32>
    %cst_29 = arith.constant dense<0.000000e+00> : vector<8xf32>
    %113 = vector.multi_reduction <add>, %112, %cst_29 [1] : vector<8x8xf32> to vector<8xf32>
    %114 = vector.shape_cast %113 : vector<8xf32> to vector<8x1xf32>
    %115 = tpu.reciprocal %114 {approx = true} : vector<8x1xf32> -> vector<8x1xf32>
    %116 = vector.broadcast %115 : vector<8x1xf32> to vector<8x8xf32>
    %117 = arith.mulf %112, %116 : vector<8x8xf32>
    %cst_30 = arith.constant dense<0.000000e+00> : vector<8x8xf32>
    %118 = tpu.matmul %117, %106, %cst_30 {dimension_numbers = #tpu.dot_dimension_numbers<[1], [0], [0], [1], [0, 0, 1, 1], [], []>} : vector<8x8xf32>, vector<8x8xf32>, vector<8x8xf32> -> vector<8x8xf32>
    %119 = tpu.concatenate %73, %88, %103, %118 in 1 : vector<8x8xf32>, vector<8x8xf32>, vector<8x8xf32>, vector<8x8xf32> -> vector<8x32xf32>
    %120 = vector.extract_strided_slice %50 {offsets = [8, 0], sizes = [8, 8], strides = [1, 1]} : vector<16x32xf32> to vector<8x8xf32>
    %121 = vector.extract_strided_slice %55 {offsets = [8, 0], sizes = [8, 8], strides = [1, 1]} : vector<16x32xf32> to vector<8x8xf32>
    %122 = vector.extract_strided_slice %56 {offsets = [8, 0], sizes = [8, 8], strides = [1, 1]} : vector<16x32xf32> to vector<8x8xf32>
    %cst_31 = arith.constant dense<0.000000e+00> : vector<8x8xf32>
    %123 = tpu.matmul %120, %121, %cst_31 {dimension_numbers = #tpu.dot_dimension_numbers<[1], [1], [0], [0], [0, 0, 1, 0], [], []>} : vector<8x8xf32>, vector<8x8xf32>, vector<8x8xf32> -> vector<8x8xf32>
    %cst_32 = arith.constant dense<0xFF800000> : vector<8xf32>
    %124 = vector.multi_reduction <maximumf>, %123, %cst_32 [1] : vector<8x8xf32> to vector<8xf32>
    %125 = vector.shape_cast %124 : vector<8xf32> to vector<8x1xf32>
    %126 = vector.broadcast %125 : vector<8x1xf32> to vector<8x8xf32>
    %127 = arith.subf %123, %126 : vector<8x8xf32>
    %128 = math.exp %127 : vector<8x8xf32>
    %cst_33 = arith.constant dense<0.000000e+00> : vector<8xf32>
    %129 = vector.multi_reduction <add>, %128, %cst_33 [1] : vector<8x8xf32> to vector<8xf32>
    %130 = vector.shape_cast %129 : vector<8xf32> to vector<8x1xf32>
    %131 = tpu.reciprocal %130 {approx = true} : vector<8x1xf32> -> vector<8x1xf32>
    %132 = vector.broadcast %131 : vector<8x1xf32> to vector<8x8xf32>
    %133 = arith.mulf %128, %132 : vector<8x8xf32>
    %cst_34 = arith.constant dense<0.000000e+00> : vector<8x8xf32>
    %134 = tpu.matmul %133, %122, %cst_34 {dimension_numbers = #tpu.dot_dimension_numbers<[1], [0], [0], [1], [0, 0, 1, 1], [], []>} : vector<8x8xf32>, vector<8x8xf32>, vector<8x8xf32> -> vector<8x8xf32>
    %135 = vector.extract_strided_slice %50 {offsets = [8, 8], sizes = [8, 8], strides = [1, 1]} : vector<16x32xf32> to vector<8x8xf32>
    %136 = vector.extract_strided_slice %55 {offsets = [8, 8], sizes = [8, 8], strides = [1, 1]} : vector<16x32xf32> to vector<8x8xf32>
    %137 = vector.extract_strided_slice %56 {offsets = [8, 8], sizes = [8, 8], strides = [1, 1]} : vector<16x32xf32> to vector<8x8xf32>
    %cst_35 = arith.constant dense<0.000000e+00> : vector<8x8xf32>
    %138 = tpu.matmul %135, %136, %cst_35 {dimension_numbers = #tpu.dot_dimension_numbers<[1], [1], [0], [0], [0, 0, 1, 0], [], []>} : vector<8x8xf32>, vector<8x8xf32>, vector<8x8xf32> -> vector<8x8xf32>
    %cst_36 = arith.constant dense<0xFF800000> : vector<8xf32>
    %139 = vector.multi_reduction <maximumf>, %138, %cst_36 [1] : vector<8x8xf32> to vector<8xf32>
    %140 = vector.shape_cast %139 : vector<8xf32> to vector<8x1xf32>
    %141 = vector.broadcast %140 : vector<8x1xf32> to vector<8x8xf32>
    %142 = arith.subf %138, %141 : vector<8x8xf32>
    %143 = math.exp %142 : vector<8x8xf32>
    %cst_37 = arith.constant dense<0.000000e+00> : vector<8xf32>
    %144 = vector.multi_reduction <add>, %143, %cst_37 [1] : vector<8x8xf32> to vector<8xf32>
    %145 = vector.shape_cast %144 : vector<8xf32> to vector<8x1xf32>
    %146 = tpu.reciprocal %145 {approx = true} : vector<8x1xf32> -> vector<8x1xf32>
    %147 = vector.broadcast %146 : vector<8x1xf32> to vector<8x8xf32>
    %148 = arith.mulf %143, %147 : vector<8x8xf32>
    %cst_38 = arith.constant dense<0.000000e+00> : vector<8x8xf32>
    %149 = tpu.matmul %148, %137, %cst_38 {dimension_numbers = #tpu.dot_dimension_numbers<[1], [0], [0], [1], [0, 0, 1, 1], [], []>} : vector<8x8xf32>, vector<8x8xf32>, vector<8x8xf32> -> vector<8x8xf32>
    %150 = vector.extract_strided_slice %50 {offsets = [8, 16], sizes = [8, 8], strides = [1, 1]} : vector<16x32xf32> to vector<8x8xf32>
    %151 = vector.extract_strided_slice %55 {offsets = [8, 16], sizes = [8, 8], strides = [1, 1]} : vector<16x32xf32> to vector<8x8xf32>
    %152 = vector.extract_strided_slice %56 {offsets = [8, 16], sizes = [8, 8], strides = [1, 1]} : vector<16x32xf32> to vector<8x8xf32>
    %cst_39 = arith.constant dense<0.000000e+00> : vector<8x8xf32>
    %153 = tpu.matmul %150, %151, %cst_39 {dimension_numbers = #tpu.dot_dimension_numbers<[1], [1], [0], [0], [0, 0, 1, 0], [], []>} : vector<8x8xf32>, vector<8x8xf32>, vector<8x8xf32> -> vector<8x8xf32>
    %cst_40 = arith.constant dense<0xFF800000> : vector<8xf32>
    %154 = vector.multi_reduction <maximumf>, %153, %cst_40 [1] : vector<8x8xf32> to vector<8xf32>
    %155 = vector.shape_cast %154 : vector<8xf32> to vector<8x1xf32>
    %156 = vector.broadcast %155 : vector<8x1xf32> to vector<8x8xf32>
    %157 = arith.subf %153, %156 : vector<8x8xf32>
    %158 = math.exp %157 : vector<8x8xf32>
    %cst_41 = arith.constant dense<0.000000e+00> : vector<8xf32>
    %159 = vector.multi_reduction <add>, %158, %cst_41 [1] : vector<8x8xf32> to vector<8xf32>
    %160 = vector.shape_cast %159 : vector<8xf32> to vector<8x1xf32>
    %161 = tpu.reciprocal %160 {approx = true} : vector<8x1xf32> -> vector<8x1xf32>
    %162 = vector.broadcast %161 : vector<8x1xf32> to vector<8x8xf32>
    %163 = arith.mulf %158, %162 : vector<8x8xf32>
    %cst_42 = arith.constant dense<0.000000e+00> : vector<8x8xf32>
    %164 = tpu.matmul %163, %152, %cst_42 {dimension_numbers = #tpu.dot_dimension_numbers<[1], [0], [0], [1], [0, 0, 1, 1], [], []>} : vector<8x8xf32>, vector<8x8xf32>, vector<8x8xf32> -> vector<8x8xf32>
    %165 = vector.extract_strided_slice %50 {offsets = [8, 24], sizes = [8, 8], strides = [1, 1]} : vector<16x32xf32> to vector<8x8xf32>
    %166 = vector.extract_strided_slice %55 {offsets = [8, 24], sizes = [8, 8], strides = [1, 1]} : vector<16x32xf32> to vector<8x8xf32>
    %167 = vector.extract_strided_slice %56 {offsets = [8, 24], sizes = [8, 8], strides = [1, 1]} : vector<16x32xf32> to vector<8x8xf32>
    %cst_43 = arith.constant dense<0.000000e+00> : vector<8x8xf32>
    %168 = tpu.matmul %165, %166, %cst_43 {dimension_numbers = #tpu.dot_dimension_numbers<[1], [1], [0], [0], [0, 0, 1, 0], [], []>} : vector<8x8xf32>, vector<8x8xf32>, vector<8x8xf32> -> vector<8x8xf32>
    %cst_44 = arith.constant dense<0xFF800000> : vector<8xf32>
    %169 = vector.multi_reduction <maximumf>, %168, %cst_44 [1] : vector<8x8xf32> to vector<8xf32>
    %170 = vector.shape_cast %169 : vector<8xf32> to vector<8x1xf32>
    %171 = vector.broadcast %170 : vector<8x1xf32> to vector<8x8xf32>
    %172 = arith.subf %168, %171 : vector<8x8xf32>
    %173 = math.exp %172 : vector<8x8xf32>
    %cst_45 = arith.constant dense<0.000000e+00> : vector<8xf32>
    %174 = vector.multi_reduction <add>, %173, %cst_45 [1] : vector<8x8xf32> to vector<8xf32>
    %175 = vector.shape_cast %174 : vector<8xf32> to vector<8x1xf32>
    %176 = tpu.reciprocal %175 {approx = true} : vector<8x1xf32> -> vector<8x1xf32>
    %177 = vector.broadcast %176 : vector<8x1xf32> to vector<8x8xf32>
    %178 = arith.mulf %173, %177 : vector<8x8xf32>
    %cst_46 = arith.constant dense<0.000000e+00> : vector<8x8xf32>
    %179 = tpu.matmul %178, %167, %cst_46 {dimension_numbers = #tpu.dot_dimension_numbers<[1], [0], [0], [1], [0, 0, 1, 1], [], []>} : vector<8x8xf32>, vector<8x8xf32>, vector<8x8xf32> -> vector<8x8xf32>
    %180 = tpu.concatenate %134, %149, %164, %179 in 1 : vector<8x8xf32>, vector<8x8xf32>, vector<8x8xf32>, vector<8x8xf32> -> vector<8x32xf32>
    %181 = tpu.concatenate %119, %180 in 0 : vector<8x32xf32>, vector<8x32xf32> -> vector<16x32xf32>
    %c0_47 = arith.constant 0 : index
    %c0_48 = arith.constant 0 : index
    %c0_49 = arith.constant 0 : index
    %182 = vector.load %arg5[%c0_47, %c0_48, %c0_49] : memref<1x32x32xf32, #tpu.memory_space<vmem>>, vector<1x32x32xf32>
    %183 = vector.shape_cast %182 : vector<1x32x32xf32> to vector<32x32xf32>
    %cst_50 = arith.constant dense<0.000000e+00> : vector<16x32xf32>
    %184 = tpu.matmul %181, %183, %cst_50 {dimension_numbers = #tpu.dot_dimension_numbers<[1], [0], [0], [1], [0, 0, 1, 1], [], []>} : vector<16x32xf32>, vector<32x32xf32>, vector<16x32xf32> -> vector<16x32xf32>
    %185 = arith.addf %184, %58 : vector<16x32xf32>
    %cst_51 = arith.constant dense<0.000000e+00> : vector<16xf32>
    %186 = vector.multi_reduction <add>, %185, %cst_51 [1] : vector<16x32xf32> to vector<16xf32>
    %187 = vector.shape_cast %186 : vector<16xf32> to vector<16x1xf32>
    %cst_52 = arith.constant 3.200000e+01 : f32
    %188 = vector.broadcast %cst_52 : f32 to vector<16x1xf32>
    %189 = arith.divf %187, %188 : vector<16x1xf32>
    %190 = vector.broadcast %189 : vector<16x1xf32> to vector<16x32xf32>
    %191 = arith.subf %185, %190 : vector<16x32xf32>
    %192 = arith.mulf %191, %191 : vector<16x32xf32>
    %cst_53 = arith.constant dense<0.000000e+00> : vector<16xf32>
    %193 = vector.multi_reduction <add>, %192, %cst_53 [1] : vector<16x32xf32> to vector<16xf32>
    %194 = vector.shape_cast %193 : vector<16xf32> to vector<16x1xf32>
    %cst_54 = arith.constant 3.200000e+01 : f32
    %195 = vector.broadcast %cst_54 : f32 to vector<16x1xf32>
    %196 = arith.divf %194, %195 : vector<16x1xf32>
    %197 = vector.broadcast %189 : vector<16x1xf32> to vector<16x32xf32>
    %198 = arith.subf %185, %197 : vector<16x32xf32>
    %cst_55 = arith.constant 9.99999974E-6 : f32
    %199 = vector.broadcast %cst_55 : f32 to vector<16x1xf32>
    %200 = arith.addf %196, %199 : vector<16x1xf32>
    %201 = math.rsqrt %200 : vector<16x1xf32>
    %202 = vector.broadcast %201 : vector<16x1xf32> to vector<16x32xf32>
    %203 = arith.mulf %198, %202 : vector<16x32xf32>
    %204 = vector.broadcast %9 : vector<1x32xf32> to vector<16x32xf32>
    %205 = arith.mulf %203, %204 : vector<16x32xf32>
    %206 = vector.broadcast %10 : vector<1x32xf32> to vector<16x32xf32>
    %207 = arith.addf %205, %206 : vector<16x32xf32>
    %c0_56 = arith.constant 0 : index
    %c0_57 = arith.constant 0 : index
    %c0_58 = arith.constant 0 : index
    %208 = vector.load %arg6[%c0_56, %c0_57, %c0_58] : memref<1x32x64xf32, #tpu.memory_space<vmem>>, vector<1x32x64xf32>
    %209 = vector.shape_cast %208 : vector<1x32x64xf32> to vector<32x64xf32>
    %cst_59 = arith.constant dense<0.000000e+00> : vector<16x64xf32>
    %210 = tpu.matmul %207, %209, %cst_59 {dimension_numbers = #tpu.dot_dimension_numbers<[1], [0], [0], [1], [0, 0, 1, 1], [], []>} : vector<16x32xf32>, vector<32x64xf32>, vector<16x64xf32> -> vector<16x64xf32>
    %211 = vector.broadcast %12 : vector<1x64xf32> to vector<16x64xf32>
    %212 = arith.addf %210, %211 : vector<16x64xf32>
    %cst_60 = arith.constant 5.000000e-01 : f32
    %213 = vector.broadcast %cst_60 : f32 to vector<16x64xf32>
    %214 = arith.mulf %213, %212 : vector<16x64xf32>
    %cst_61 = arith.constant 0.707106769 : f32
    %215 = vector.broadcast %cst_61 : f32 to vector<16x64xf32>
    %216 = arith.mulf %212, %215 : vector<16x64xf32>
    %217 = math.erf %216 : vector<16x64xf32>
    %cst_62 = arith.constant 1.000000e+00 : f32
    %218 = vector.broadcast %cst_62 : f32 to vector<16x64xf32>
    %219 = arith.addf %218, %217 : vector<16x64xf32>
    %220 = arith.mulf %214, %219 : vector<16x64xf32>
    %c0_63 = arith.constant 0 : index
    %c0_64 = arith.constant 0 : index
    %c0_65 = arith.constant 0 : index
    %221 = vector.load %arg7[%c0_63, %c0_64, %c0_65] : memref<1x64x32xf32, #tpu.memory_space<vmem>>, vector<1x64x32xf32>
    %222 = vector.shape_cast %221 : vector<1x64x32xf32> to vector<64x32xf32>
    %cst_66 = arith.constant dense<0.000000e+00> : vector<16x32xf32>
    %223 = tpu.matmul %220, %222, %cst_66 {dimension_numbers = #tpu.dot_dimension_numbers<[1], [0], [0], [1], [0, 0, 1, 1], [], []>} : vector<16x64xf32>, vector<64x32xf32>, vector<16x32xf32> -> vector<16x32xf32>
    %224 = vector.broadcast %11 : vector<1x32xf32> to vector<16x32xf32>
    %225 = arith.addf %223, %224 : vector<16x32xf32>
    %226 = arith.addf %225, %185 : vector<16x32xf32>
    %c1_i32 = arith.constant 1 : i32
    %227 = arith.cmpi slt, %arg0, %c1_i32 : i32
    %228 = arith.extui %227 : i1 to i32
    %c0_i32_67 = arith.constant 0 : i32
    %229 = arith.cmpi ne, %228, %c0_i32_67 : i32
    scf.if %229 {
      %c0_70 = arith.constant 0 : index
      %c0_71 = arith.constant 0 : index
      %233 = vector.load %arg9[%c0_70, %c0_71] : memref<16x32xf32, #tpu.memory_space<vmem>>, vector<16x32xf32>
      tpu.vector_store %arg9[%c0_70, %c0_71], %226 {strides = array<i32>} : memref<16x32xf32, #tpu.memory_space<vmem>>, vector<16x32xf32>,
    } else {
    }
    %c1_i32_68 = arith.constant 1 : i32
    %230 = arith.cmpi eq, %arg0, %c1_i32_68 : i32
    %231 = arith.extui %230 : i1 to i32
    %c0_i32_69 = arith.constant 0 : i32
    %232 = arith.cmpi ne, %231, %c0_i32_69 : i32
    scf.if %232 {
      %c0_70 = arith.constant 0 : index
      %c0_71 = arith.constant 0 : index
      %233 = vector.load %arg3[%c0_70, %c0_71] : memref<2x32xf32, #tpu.memory_space<vmem>>, vector<2x32xf32>
      %234 = vector.extract_strided_slice %233 {offsets = [0, 0], sizes = [1, 32], strides = [1, 1]} : vector<2x32xf32> to vector<1x32xf32>
      %235 = vector.extract_strided_slice %233 {offsets = [1, 0], sizes = [1, 32], strides = [1, 1]} : vector<2x32xf32> to vector<1x32xf32>
      %cst_72 = arith.constant dense<0.000000e+00> : vector<16xf32>
      %236 = vector.multi_reduction <add>, %226, %cst_72 [1] : vector<16x32xf32> to vector<16xf32>
      %237 = vector.shape_cast %236 : vector<16xf32> to vector<16x1xf32>
      %cst_73 = arith.constant 3.200000e+01 : f32
      %238 = vector.broadcast %cst_73 : f32 to vector<16x1xf32>
      %239 = arith.divf %237, %238 : vector<16x1xf32>
      %240 = vector.broadcast %239 : vector<16x1xf32> to vector<16x32xf32>
      %241 = arith.subf %226, %240 : vector<16x32xf32>
      %242 = arith.mulf %241, %241 : vector<16x32xf32>
      %cst_74 = arith.constant dense<0.000000e+00> : vector<16xf32>
      %243 = vector.multi_reduction <add>, %242, %cst_74 [1] : vector<16x32xf32> to vector<16xf32>
      %244 = vector.shape_cast %243 : vector<16xf32> to vector<16x1xf32>
      %cst_75 = arith.constant 3.200000e+01 : f32
      %245 = vector.broadcast %cst_75 : f32 to vector<16x1xf32>
      %246 = arith.divf %244, %245 : vector<16x1xf32>
      %247 = vector.broadcast %239 : vector<16x1xf32> to vector<16x32xf32>
      %248 = arith.subf %226, %247 : vector<16x32xf32>
      %cst_76 = arith.constant 9.99999974E-6 : f32
      %249 = vector.broadcast %cst_76 : f32 to vector<16x1xf32>
      %250 = arith.addf %246, %249 : vector<16x1xf32>
      %251 = math.rsqrt %250 : vector<16x1xf32>
      %252 = vector.broadcast %251 : vector<16x1xf32> to vector<16x32xf32>
      %253 = arith.mulf %248, %252 : vector<16x32xf32>
      %254 = vector.broadcast %234 : vector<1x32xf32> to vector<16x32xf32>
      %255 = arith.mulf %253, %254 : vector<16x32xf32>
      %256 = vector.broadcast %235 : vector<1x32xf32> to vector<16x32xf32>
      %257 = arith.addf %255, %256 : vector<16x32xf32>
      %c0_77 = arith.constant 0 : index
      %c0_78 = arith.constant 0 : index
      %258 = vector.load %arg9[%c0_77, %c0_78] : memref<16x32xf32, #tpu.memory_space<vmem>>, vector<16x32xf32>
      tpu.vector_store %arg9[%c0_77, %c0_78], %257 {strides = array<i32>} : memref<16x32xf32, #tpu.memory_space<vmem>>, vector<16x32xf32>,
    } else {
    }
    return
  }
  func.func @transform_0(%arg0: i32) -> (i32, i32) {
    %c0_i32 = arith.constant 0 : i32
    %c0_i32_0 = arith.constant 0 : i32
    %c0_i32_1 = arith.constant 0 : i32
    return %c0_i32, %c0_i32_0 : i32, i32
  }
  func.func @transform_1(%arg0: i32) -> (i32, i32) {
    %c0_i32 = arith.constant 0 : i32
    %c0_i32_0 = arith.constant 0 : i32
    %c0_i32_1 = arith.constant 0 : i32
    return %c0_i32, %c0_i32_0 : i32, i32
  }
  func.func @transform_2(%arg0: i32) -> (i32, i32) {
    %c0_i32 = arith.constant 0 : i32
    %c0_i32_0 = arith.constant 0 : i32
    %c0_i32_1 = arith.constant 0 : i32
    return %c0_i32, %c0_i32_0 : i32, i32
  }
  func.func @transform_3(%arg0: i32) -> (i32, i32, i32) {
    %c0_i32 = arith.constant 0 : i32
    %c0_i32_0 = arith.constant 0 : i32
    %c0_i32_1 = arith.constant 0 : i32
    return %arg0, %c0_i32, %c0_i32_0 : i32, i32, i32
  }
  func.func @transform_4(%arg0: i32) -> (i32, i32, i32) {
    %c0_i32 = arith.constant 0 : i32
    %c0_i32_0 = arith.constant 0 : i32
    %c0_i32_1 = arith.constant 0 : i32
    return %arg0, %c0_i32, %c0_i32_0 : i32, i32, i32
  }
  func.func @transform_5(%arg0: i32) -> (i32, i32, i32) {
    %c0_i32 = arith.constant 0 : i32
    %c0_i32_0 = arith.constant 0 : i32
    %c0_i32_1 = arith.constant 0 : i32
    return %arg0, %c0_i32, %c0_i32_0 : i32, i32, i32
  }
  func.func @transform_6(%arg0: i32) -> (i32, i32, i32) {
    %c0_i32 = arith.constant 0 : i32
    %c0_i32_0 = arith.constant 0 : i32
    %c0_i32_1 = arith.constant 0 : i32
    return %arg0, %c0_i32, %c0_i32_0 : i32, i32, i32
  }
  func.func @transform_7(%arg0: i32) -> (i32, i32, i32) {
    %c0_i32 = arith.constant 0 : i32
    %c0_i32_0 = arith.constant 0 : i32
    %c0_i32_1 = arith.constant 0 : i32
    return %arg0, %c0_i32, %c0_i32_0 : i32, i32, i32
  }
  func.func @transform_8(%arg0: i32) -> (i32, i32) {
    %c0_i32 = arith.constant 0 : i32
    %c0_i32_0 = arith.constant 0 : i32
    %c0_i32_1 = arith.constant 0 : i32
    return %c0_i32, %c0_i32_0 : i32, i32
  }
}

</mosaic_0001>

<bundles_post_ra>
// kernel: tpu_custom_call.1
= control target key start
LH: loop header
LB: loop body
LE: loop exit
PB: predicated region body
PF: predicated region fallthrough
CT: control target
= control target key end

     0   :  { %s3678_s0 = inlined_call_operand.hbm [shape: f32[16,32], index: 0, kind: input, shape index: {}]   ;;  %s3679_s1 = inlined_call_operand.hbm [shape: f32[16,32], index: 1, kind: input, shape index: {}]   ;;  %s3680_s2 = inlined_call_operand.vmem [shape: f32[2,32], index: 2, kind: input, shape index: {}]   ;;  %s3681_s3 = inlined_call_operand.vmem [shape: f32[2,32,160], index: 3, kind: input, shape index: {}]   ;;  %s3682_s4 = inlined_call_operand.vmem [shape: f32[2,32,32], index: 4, kind: input, shape index: {}]   ;;  %s3683_s5 = inlined_call_operand.hbm [shape: f32[2,32,64], index: 5, kind: input, shape index: {}]   ;;  %s3684_s6 = inlined_call_operand.vmem [shape: f32[2,64,32], index: 6, kind: input, shape index: {}]   ;;  %s3685_s7 = inlined_call_operand.hbm [shape: f32[2,8,160], index: 7, kind: input, shape index: {}]   ;;  %s3686_s8 = inlined_call_operand.hbm [shape: f32[16,32], index: 8, kind: output, shape index: {}]  }
   0x1   :  { %3697 = sst [smem:[#allocation16_spill]] %s3686_s8 }
   0x2   :  { %13 = vsyncpa [#allocation3], 0 }
   0x3   :  { %14 = vsyncpa [#allocation6], 0 }
   0x4   :  { %15 = vsyncpa [#allocation4], 0  ;;  %s3160_s27 = smov 0   ;;  %s3162_s28 = smov 0  }
   0x5   :  { %s3164_s29 = smov 0   ;;  %s3166_s30 = smov 0  }
   0x6 LB: > { %s3179_s9 = sadd.s32 4294967295, %s3091_s30   ;;  %s3182_s10 = sadd.s32 1, %s3091_s30   ;;  %s3091_s30 = sphi %s3166_s30, %s3720_s30   ;;  %s3087_s29 = sphi %s3164_s29, %s3724_s29   ;;  %s3083_s28 = sphi %s3162_s28, %s3723_s28   ;;  %s3079_s27 = sphi %s3160_s27, %s3722_s27  }
   0x7   : > { %3698 = sst [smem:[#allocation14_spill]] %s3182_s10  ;;  %s140_s11 = ssub.s32 %s3091_s30, %s3182_s10 }
   0x8   : > { %s143_s12 = sadd.s32 1, %s3087_s29  ;;  %p141_p0 = scmp.eq.s32.totalorder %s140_s11, 0 }
   0x9   : > { %p150_p1 = scmp.ne.s32.totalorder %s3087_s29, %s3083_s28  ;;  %p151_p2 = scmp.eq.s32.totalorder %s3091_s30, 0 }
   0xa   : > { %p156_p3 = scmp.ne.s32.totalorder %s3083_s28, %s3079_s27  ;;  %p3687_p5 = scmp.eq.s32.totalorder %s3179_s9, 0 }
   0xb   : > { %s3192_s13 = scalar_select %p141_p0, %s3087_s29, %s143_s12  }
   0xc   : > { %p3194_p4 = por %p151_p2, %p150_p1  ;;  %p2486_p6 = scmp.ge.s32.totalorder %s3091_s30, 1 }
   0xd   : > { %3699 = sst [smem:[#allocation15_spill]] %s3192_s13  ;;  %p240_p7 = scmp.lt.s32.totalorder %s3091_s30, 3 }
   0xe   : > { %p3203_p8 = por %p3687_p5, %p156_p3  ;;  %s3093_s17 = smov [#allocation2]  }
   0xf   : > { %p3208_p10 = pnand %p2486_p6, %p240_p7  ;;  %s252_s18 = sshll.u32 %s3093_s17, 4  ;;  %s253_s18 = int_to_ptr.vmem [resolvable:$true] %s252_s18 }
  0x10   : > { %s3701_s15 = scalar_select %p3203_p8, 1, 0 }
  0x11   : > { %s3702_s16 = scalar_select %p3208_p10, 1, 0 }
  0x12   : > { %p2782_p11 = pneg %p3208_p10  ;;  %p2798_p13 = scmp.lt.s32.totalorder %s3091_s30, 2 }
  0x13   : > { %s300_s21 = sand.u32 1, %s3087_s29   ;;  %s2903_s25 = scalar_lea.hbm %s3678_s0, 256 }
  0x14   : > { %p3216_p12 = pnand %p2782_p11, %p3687_p5  ;;  %p3225_p0 = pnand %p2798_p13, %p3194_p4 }
  0x15   : > { %p2904_p1 = scmp.ne.s32.totalorder %s3678_s0, %s2903_s25  ;;  %p2910_p4 = scmp.lt.u32.totalorder %s2903_s25, %s3678_s0 }
  0x16   : > { %s3704_s22 = scalar_select %p3225_p0, 1, 0 }
  0x17   : > { %p3694_p2 = pneg %p3216_p12 }
  0x19   : > { %p2906_p3 = pnand %p3694_p2, %p2904_p1 }
  0x1b   : > { %p2907_p6 = pneg %p2906_p3 }
  0x1d   : > { %p2912_p7 = pnand %p2910_p4, %p2907_p6 }
  0x1f   : > { %2915 = shalt.err (!%p2912_p7)
}
  0x20   : > { %s2916_s14 = scalar_lea.vmem %s253_s18, 256  ;;  %p2924_p5 = scmp.lt.s32.totalorder %s253_s18, %s253_s18 }
  0x21   : > { %p2917_p11 = scmp.ne.s32.totalorder %s253_s18, %s2916_s14  ;;  %p2925_p8 = scmp.lt.s32.totalorder %s2916_s14, %s2916_s14 }
  0x23   : > { %p2919_p13 = pnand %p2917_p11, %p3694_p2  ;;  %p2926_p10 = por %p2925_p8, %p2924_p5 }
  0x25   : > { %p2920_p9 = pneg %p2919_p13 }
  0x27   : > { %p2927_p0 = pnand %p2926_p10, %p2920_p9 }
  0x29   : > { %2930 = shalt.err (!%p2927_p0)
}
  0x2a   : > { %s3094_s17 = smov 128   ;;  %s3095_s23 = smov 8  }
  0x2b   : > { %2785 = dma.hbm_to_vmem [thread:$0]  (!%p3216_p12), %s3678_s0, 256, %s253_s18, [#allocation3], %s3094_s17, %s3094_s17, %s3095_s23  }
  0x2c   : > { %s2490_s26 = sshll.u32 %s300_s21, 5  ;;  %s2546_s27 = sshll.u32 %s3091_s30, 9 }
  0x2d   : > { %s3260_s14 = scalar_lea.hbm %s3683_s5, %s2546_s27  ;;  %s302_s20 = scalar_lea.vmem [#allocation7], %s2490_s26 }
  0x2e   : > { %s309_s13 = sshll.u32 %s302_s20, 4  ;;  %s3096_s10 = smov [#allocation5]   ;;  %s3262_s13 = int_to_ptr.vmem [resolvable:$true] %s309_s13 }
  0x2f   : > { %s3264_s8 = sshll.u32 %s3096_s10, 4  ;;  %s3705_s18 = sand.u32 1, %s3091_s30   ;;  %s266_s8 = int_to_ptr.vmem [resolvable:$true] %s3264_s8 }
  0x30   : > { %s3268_s24 = scalar_lea.sflag [#allocation3], %s3705_s18  ;;  %s2931_s25 = scalar_lea.hbm %s3260_s14, 512 }
  0x31   : > { %p2932_p5 = scmp.ne.s32.totalorder %s3260_s14, %s2931_s25  ;;  %p3706_p8 = scmp.ne.s32.totalorder %s3704_s22, 0 }
  0x32   : > { %s2936_s20 = scalar_lea.hbm %s3683_s5, 1024  ;;  %p2937_p1 = scmp.lt.u32.totalorder %s3260_s14, %s3683_s5 }
  0x33   : > { %p3695_p9 = pneg %p3706_p8  ;;  %p2938_p3 = scmp.lt.u32.totalorder %s2936_s20, %s2931_s25 }
  0x34   : > { %p2940_p4 = scmp.lt.u32.totalorder %s2931_s25, %s3260_s14 }
  0x35   : > { %p2934_p10 = pnand %p3695_p9, %p2932_p5  ;;  %p2939_p6 = por %p2938_p3, %p2937_p1 }
  0x37   : > { %p2935_p0 = pneg %p2934_p10  ;;  %p2941_p7 = por %p2940_p4, %p2939_p6 }
  0x39   : > { %p2942_p11 = pnand %p2941_p7, %p2935_p0 }
  0x3b   : > { %2945 = shalt.err (!%p2942_p11)
}
  0x3c   : > { %s2946_s10 = scalar_lea.vmem %s3262_s13, 512  ;;  %s3097_s18 = smov [#allocation7]  }
  0x3d   : > { %p2947_p13 = scmp.ne.s32.totalorder %s3262_s13, %s2946_s10  ;;  %s2951_s27 = sshll.u32 %s3097_s18, 4  ;;  %s2952_s27 = int_to_ptr.vmem [resolvable:$false] %s2951_s27 }
  0x3e   : > { %s2953_s11 = scalar_lea.vmem %s2952_s27, 1024  ;;  %p2954_p2 = scmp.lt.s32.totalorder %s3262_s13, %s2952_s27 }
  0x3f   : > { %p2949_p5 = pnand %p2947_p13, %p3695_p9  ;;  %p2955_p1 = scmp.lt.s32.totalorder %s2953_s11, %s2946_s10 }
  0x41   : > { %p2950_p10 = pneg %p2949_p5  ;;  %p2956_p3 = por %p2955_p1, %p2954_p2 }
  0x43   : > { %p2957_p6 = pnand %p2956_p3, %p2950_p10 }
  0x45   : > { %2960 = shalt.err (!%p2957_p6)
}
  0x46   : > { %2792 = dma.hbm_to_vmem [thread:$0]  (!%p3706_p8), %s3260_s14, 512, %s3262_s13, %s3268_s24, %s3094_s17, %s3094_s17, %s3095_s23  }
  0x47   : > { %s2493_s25 = sshll.u32 %s300_s21, 4  ;;  %s2961_s12 = scalar_lea.hbm %s3679_s1, 256 }
  0x48   : > { %p2962_p2 = scmp.ne.s32.totalorder %s3679_s1, %s2961_s12  ;;  %p3707_p0 = pneg %p3216_p12 }
  0x49   : > { %p2968_p11 = scmp.lt.u32.totalorder %s2961_s12, %s3679_s1 }
  0x4a   : > { %p2964_p4 = pnand %p2962_p2, %p3707_p0 }
  0x4c   : > { %p2965_p7 = pneg %p2964_p4 }
  0x4e   : > { %p2970_p13 = pnand %p2968_p11, %p2965_p7 }
  0x50   : > { %2973 = shalt.err (!%p2970_p13)
}
  0x51   : > { %s2974_s13 = scalar_lea.vmem %s266_s8, 256  ;;  %p3708_p10 = pmov %p3707_p0 }
  0x52   : > { %p2975_p5 = scmp.ne.s32.totalorder %s266_s8, %s2974_s13  ;;  %p2982_p6 = scmp.lt.s32.totalorder %s266_s8, %s266_s8 }
  0x53   : > { %p2983_p9 = scmp.lt.s32.totalorder %s2974_s13, %s2974_s13 }
  0x54   : > { %p2977_p1 = pnand %p2975_p5, %p3708_p10 }
  0x55   : > { %p2984_p8 = por %p2983_p9, %p2982_p6 }
  0x56   : > { %p2978_p3 = pneg %p2977_p1 }
  0x58   : > { %p2985_p0 = pnand %p2984_p8, %p2978_p3 }
  0x5a   : > { %2988 = shalt.err (!%p2985_p0)
}
  0x5b   : > { %2788 = dma.hbm_to_vmem [thread:$0]  (!%p3216_p12), %s3679_s1, 256, %s266_s8, [#allocation6], %s3094_s17, %s3094_s17, %s3095_s23  }
  0x5c   : > { %s2547_s20 = sshll.u32 %s3091_s30, 8  ;;  %s331_s19 = scalar_lea.vmem [#allocation8], %s2493_s25 }
  0x5d   : > { %s3329_s10 = scalar_lea.hbm %s3685_s7, %s2547_s20  ;;  %s339_s18 = sshll.u32 %s331_s19, 4  ;;  %s340_s18 = int_to_ptr.vmem [resolvable:$true] %s339_s18 }
  0x5e   : > { %s2989_s27 = scalar_lea.hbm %s3329_s10, 256  ;;  %p3709_p9 = scmp.ne.s32.totalorder %s3704_s22, 0 }
  0x5f   : > { %p2990_p8 = scmp.ne.s32.totalorder %s3329_s10, %s2989_s27  ;;  %s2994_s17 = scalar_lea.hbm %s3685_s7, 512 }
  0x60   : > { %p3710_p2 = pneg %p3709_p9  ;;  %p2995_p12 = scmp.lt.u32.totalorder %s3329_s10, %s3685_s7 }
  0x61   : > { %p2996_p11 = scmp.lt.u32.totalorder %s2994_s17, %s2989_s27  ;;  %p2998_p5 = scmp.lt.u32.totalorder %s2989_s27, %s3329_s10 }
  0x62   : > { %p2992_p4 = pnand %p2990_p8, %p3710_p2 }
  0x63   : > { %p2997_p13 = por %p2996_p11, %p2995_p12 }
  0x64   : > { %p2993_p7 = pneg %p2992_p4 }
  0x65   : > { %p2999_p10 = por %p2998_p5, %p2997_p13 }
  0x67   : > { %p3000_p1 = pnand %p2999_p10, %p2993_p7 }
  0x69   : > { %3003 = shalt.err (!%p3000_p1)
}
  0x6a   : > { %s3004_s25 = scalar_lea.vmem %s340_s18, 256  ;;  %p3711_p6 = pmov %p3710_p2 }
  0x6b   : > { %p3005_p3 = scmp.ne.s32.totalorder %s340_s18, %s3004_s25  ;;  %s3098_s13 = smov [#allocation8]  }
  0x6c   : > { %s3009_s21 = sshll.u32 %s3098_s13, 4  ;;  %s3010_s21 = int_to_ptr.vmem [resolvable:$false] %s3009_s21 }
  0x6d   : > { %p3007_p0 = pnand %p3005_p3, %p3711_p6  ;;  %s3011_s14 = scalar_lea.vmem %s3010_s21, 512 }
  0x6e   : > { %p3012_p2 = scmp.lt.s32.totalorder %s340_s18, %s3010_s21  ;;  %p3013_p4 = scmp.lt.s32.totalorder %s3011_s14, %s3004_s25 }
  0x6f   : > { %p3008_p8 = pneg %p3007_p0 }
  0x70   : > { %p3014_p11 = por %p3013_p4, %p3012_p2 }
  0x72   : > { %p3015_p12 = pnand %p3014_p11, %p3008_p8 }
  0x74   : > { %3018 = shalt.err (!%p3015_p12)
}
  0x75   : > { %2795 = dma.hbm_to_vmem [thread:$0]  (!%p3709_p9), %s3329_s10, 256, %s340_s18, %s3268_s24  }
  0x76   : > { %p3712_p7 = scmp.ne.s32.totalorder %s3702_s16, 0 }
  0x77   : > { %p3713_p13 = scmp.eq.s32.totalorder (!%p3712_p7), %s3179_s9, 0 }
  0x78   : > { %348 = sbr.rel (%p3712_p7) target bundleno = 3703 (0xe77), region = 52 }
  0x7f   : > { %3062 = dma.done.wait (%p3713_p13), [#allocation3], 256   ;;  %p3714_p5 = pmov %p3713_p13 }
  0x81   : > { %3064 = vsyncadd (%p3714_p5), [#allocation3], 4294967040  ;;  %p3715_p10 = pmov %p3714_p5 }
  0x82   : > { %p3716_p1 = pmov %p3714_p5 }
  0x83   : > { %3066 = dma.done.wait (%p3715_p10), [#allocation6], 256  }
  0x84   : > { %3068 = vsyncadd (%p3716_p1), [#allocation6], 4294967040  ;;  %s358_s22 = sand.u32 1, %s3179_s9   ;;  %s360_s24 = sand.u32 1, %s3083_s28  }
  0x85   : > { %s2499_s20 = sshll.u32 %s360_s24, 5  ;;  %s359_s16 = scalar_lea.sflag [#allocation3], %s358_s22 }
  0x86   : > { %s3363_s26 = scalar_lea.vmem [#allocation7], %s2499_s20  ;;  %p3717_p9 = scmp.ne.s32.totalorder %s3701_s15, 0 }
  0x88   : > { %3070 = dma.done.wait (%p3717_p9), %s359_s16, 768  }
  0x89   : > { %3072 = vsyncadd (%p3717_p9), %s359_s16, 4294966528  ;;  %s3369_s12 = sshll.u32 %s360_s24, 4  ;;  %p419_p3 = scmp.lt.s32.totalorder %s3179_s9, 1 }
  0x8a   : > { %s371_s21 = scalar_lea.vmem [#allocation8], %s3369_s12  ;;  %p3718_p6 = scmp.ne.s32.totalorder %s3179_s9, 0 }
  0x8b   : > { %s420_s10 = scalar_select %p419_p3, %s3179_s9, 1 }
  0x8c   : > { %437 = sbr.rel (%p3718_p6) target bundleno = 147 (0x93), region = 72  ;;  %v438_v0 = vld [vmem:[#allocation2] sm:$0xff] (!%p3718_p6)  ;;  %vm440_vm0 = vcmask (!%p3718_p6), 261120   ;;  %v439_v1 = vld [vmem:[#allocation2 + $0x8] sm:$0xff] (!%p3718_p6) }
  0x8d   : > { %s2548_s19 = sshll.u32 %s420_s10, 6  ;;  %s2549_s18 = sshll.u32 %s420_s10, 5  ;;  %441 = vst.msk [vmem:[#allocation9] sm:$0xff] (!%p3718_p6), %vm440_vm0, %v438_v0  ;;  %442 = vst.msk [vmem:[#allocation9 + $0x8] sm:$0xff] (!%p3718_p6), %vm440_vm0, %v439_v1 }
  0x8e   : > { %s3376_s30 = scalar_lea.vmem %s3681_s3, %s2548_s19  ;;  %s3381_s11 = scalar_lea.vmem %s3682_s4, %s2549_s18 }
  0x8f   : > { %s3386_s13 = scalar_lea.vmem %s3684_s6, %s2548_s19 }
  0x93 PF: > { %vm449_vm1 = vcmask 261120   ;;  %v490_v9 = vld [vmem:[%s3376_s30 + $0x8] sm:$0xff]  ;;  %v492_v10 = vld [vmem:[%s3376_s30 + $0x18] sm:$0xff]  ;;  %v489_v11 = vld [vmem:[%s3376_s30] sm:$0xff]  ;;  %v3099_v16 = vmov 0.0   ;;  %s3100_s14 = smov 96   ;;  %v477_v28 = vlaneseq }
  0x94   : > { %v3391_v2 = vld [vmem:[#allocation9] sm:$0xff]  ;;  %v2726_v12 = vpack.c.bf16 %v492_v10, %v490_v9  ;;  %v491_v13 = vld [vmem:[%s3376_s30 + $0x10] sm:$0xff]  ;;  %v494_v14 = vld [vmem:[%s3376_s30 + $0x28] sm:$0xff]  ;;  %575 = vmatprep.mubr.f32.mxu0 %v3099_v16  ;;  %2610 = vmatprep.subr.mxu1 %v3099_v16  ;;  %s3101_s22 = smov 64   ;;  %s3102_s24 = smov 32   ;;  %vm3103_vm2 = vmmov 0  }
  0x95   : > { %v450_v3 = vsel %vm449_vm1, %v3391_v2, 0.0  ;;  %v496_v15 = vld [vmem:[%s3376_s30 + $0x38] sm:$0xff]  ;;  %v2728_v17 = vpack.c.bf16 %v491_v13, %v489_v11  ;;  %v493_v19 = vld [vmem:[%s3376_s30 + $0x20] sm:$0xff]  ;;  %v495_v20 = vld [vmem:[%s3376_s30 + $0x30] sm:$0xff]  ;;  %v3417_v30 = vshrl.u32 %v477_v28, 7  ;;  %2612 = vmatprep.mubr.msk.f32.mxu1 %vm3103_vm2, %v3099_v16  ;;  %vm636_vm3 = vcmask 64512  }
  0x96   : > { %451 = vadd.xlane.f32.xlu0 %v450_v3  ;;  %v2730_v18 = vpack.c.bf16 %v496_v15, %v494_v14  ;;  %2727 = vmatprep.subr.bf16.mxu0 %v2726_v12  ;;  %v2732_v21 = vpack.c.bf16 %v495_v20, %v493_v19  ;;  %v448_v22 = vld [vmem:[#allocation5 + $0x8] sm:$0xff]  ;;  %v3408_v23 = vld [vmem:[#allocation5] sm:$0xff]  ;;  %v3413_v24 = vld [vmem:[#allocation9 + $0x8] sm:$0xff]  ;;  %s3104_s20 = smov 56   ;;  %s3105_s16 = smov 120   ;;  %vm1305_vm4 = vcmask 130048  }
  0x97   : > { %2729 = vmatpush1.bf16.msra.mxu0 %v2728_v17  ;;  %612 = vrot.lane.b32.xlu1 %v448_v22, %s3100_s14  ;;  %v453_v25 = vsel %vm449_vm1, %v3413_v24, 0.0  ;;  %v479_v31 = vsub.s32 0, %v3417_v30  ;;  %v3422_v32 = vld [vmem:[%s371_s21] sm:$0xff]  ;;  %v485_v33 = vsub.s32 1, %v3417_v30  ;;  %v499_v40 = vsub.s32 7, %v3417_v30  ;;  %v446_v41 = vld [vmem:[%s371_s21 + $0x8] sm:$0xff] }
  0x98   : > { %2731 = vmatprep.subr.bf16.mxu0 %v2730_v18  ;;  %s3106_s12 = smov 48   ;;  %s3107_s10 = smov 112   ;;  %vm1307_vm5 = vcmask 195584   ;;  %vm2216_vm6 = vcmask 523264  }
  0x99   : > { %v480_v34 = vrot.slane %v3422_v32, %v479_v31  ;;  %v486_v37 = vrot.slane %v3422_v32, %v485_v33  ;;  %v500_v42 = vrot.slane %v3422_v32, %v499_v40  ;;  %v3437_v43 = vrot.slane %v446_v41, %v499_v40  ;;  %s3108_s19 = smov 104   ;;  %s3109_s18 = smov 40  }
  0x9a   : > { %s3110_s27 = smov 8   ;;  %s3111_s8 = smov 16  }
  0x9b   : > { %2733 = vmatpush1.bf16.msra.mxu0 %v2732_v21  ;;  %s3112_s30 = smov 24   ;;  %p2540_p0 = scmp.ge.s32.totalorder %s3179_s9, 1 }
  0x9c   : > { %2605 = vmatprep.subr.mxu0 %v3099_v16 }
  0xbb   : > { %454 = vadd.xlane.f32.xlu1 %v453_v25 }
 0x109   : > { %v613_v45 = vpop.permute.xlu1 %612 }
 0x123   : > { %v452_v4 = vpop.xlane.xlu0 %451 }
 0x124   : > { %v457_v5 = vmul.f32 0.03125, %v452_v4 }
 0x126   : > { %v459_v6 = vsub.f32 %v3391_v2, %v457_v5 }
 0x128   : > { %v461_v7 = vmul.f32 %v459_v6, %v459_v6 }
 0x12a   : > { %v463_v8 = vsel %vm449_vm1, %v461_v7, 0.0 }
 0x12b   : > { %464 = vadd.xlane.f32.xlu0 %v463_v8 }
 0x141   : > { %607 = vrot.lane.b32.xlu0 %v3408_v23, %s3101_s22 }
 0x148   : > { %v455_v50 = vpop.xlane.xlu1 %454 }
 0x149   : > { %v458_v51 = vmul.f32 0.03125, %v455_v50 }
 0x14b   : > { %v460_v52 = vsub.f32 %v3413_v24, %v458_v51 }
 0x14d   : > { %v462_v53 = vmul.f32 %v460_v52, %v460_v52 }
 0x14f   : > { %v466_v54 = vsel %vm449_vm1, %v462_v53, 0.0 }
 0x1b8   : > { %v465_v26 = vpop.xlane.xlu0 %464 }
 0x1b9   : > { %v469_v27 = vmul.f32 0.03125, %v465_v26 }
 0x1bb   : > { %v471_v29 = vadd.f32 1e-05, %v469_v27 }
 0x1bc   : > { %v608_v55 = vpop.permute.xlu0 %607 }
 0x1bd   : > { %2855 = vrsqrt.f32 %v471_v29 }
 0x1c7   : > { %v2856_v35 = vpop.eup %2855 }
 0x1c8   : > { %v475_v36 = vmul.f32 %v2856_v35, %v459_v6 }
 0x1ca   : > { %v481_v38 = vmul.f32 %v480_v34, %v475_v36 }
 0x1cc   : > { %v487_v39 = vadd.f32 %v486_v37, %v481_v38 }
 0x1ce   : > { %2508 = vmatmul.mubr.msk.f32.vlgmr.msra.gmra.mrb[0].mxu0 %vm449_vm1, %v487_v39 }
 0x1cf   : > { %581 = vmatprep.mubr.f32.mxu0 %v3099_v16 }
 0x2a1   : > { %v577_v44 = vpop.f32.mrb[0].mxu0 }
 0x2a2   : > { %v578_v46 = vadd.f32 %v577_v44, %v500_v42  ;;  %v579_v47 = vpop.f32.mrb[1].mxu0 }
 0x2a3   : > { %v3440_v48 = vadd.f32 %v579_v47, %v3437_v43 }
 0x2a4   : > { %v615_v49 = vmul.f32 %v613_v45, %v578_v46  ;;  %v610_v56 = vmul.f32 %v608_v55, %v578_v46  ;;  %v588_v6 = vmul.f32 %v578_v46, %v3408_v23 }
 0x2a5   : > { %2611 = vmatpush3.msra.mxu1 %v3440_v48 }
 0x2a6   : > { %619 = vrot.lane.b32.xlu0 %v615_v49, %s3100_s14  ;;  %2615 = vmatprep.subr.mxu1 %v3099_v16 }
 0x2aa   : > { %591 = vrot.lane.b32.xlu0 %v448_v22, %s3102_s24 }
 0x2c9   : > { %467 = vadd.xlane.f32.xlu0 %v466_v54 }
 0x318   : > { %v620_v57 = vpop.permute.xlu0 %619 }
 0x319   : > { %v3449_v58 = vadd.f32 %v620_v57, %v610_v56 }
 0x31b   : > { %634 = vrot.lane.b32.xlu1 %v3449_v58, %s3101_s22 }
 0x31c   : > { %v592_v59 = vpop.permute.xlu0 %591 }
 0x31d   : > { %v594_v60 = vmul.f32 %v592_v59, %v578_v46 }
 0x31f   : > { %598 = vrot.lane.b32.xlu1 %v594_v60, %s3100_s14 }
 0x356   : > { %v468_v61 = vpop.xlane.xlu0 %467 }
 0x357   : > { %v470_v62 = vmul.f32 0.03125, %v468_v61 }
 0x359   : > { %v472_v63 = vadd.f32 1e-05, %v470_v62 }
 0x35b   : > { %2857 = vrsqrt.f32 %v472_v63 }
 0x365   : > { %v2858_v0 = vpop.eup %2857 }
 0x366   : > { %v476_v1 = vmul.f32 %v2858_v0, %v460_v52 }
 0x368   : > { %v482_v3 = vmul.f32 %v480_v34, %v476_v1 }
 0x36a   : > { %v488_v4 = vadd.f32 %v486_v37, %v482_v3 }
 0x36c   : > { %2509 = vmatmul.mubr.msk.f32.gmra.mrb[2].mxu0 %vm449_vm1, %v488_v4 }
 0x36d   : > { %2607 = vmatprep.mubr.msk.f32.mxu0 %vm3103_vm2, %v3099_v16 }
 0x38d   : > { %v635_v5 = vpop.permute.xlu1 %634 }
 0x38e   : > { %2606 = vmatpush3.xpose.msk.msra.mxu0 %vm636_vm3, %v635_v5 }
 0x38f   : > { %2620 = vmatprep.subr.mxu0 %v3099_v16 }
 0x391   : > { %v599_v7 = vpop.permute.xlu1 %598 }
 0x392   : > { %v604_v8 = vadd.f32 %v599_v7, %v588_v6 }
 0x394   : > { %2608 = vmatmul.mubr.msk.f32.vlgmr.msra.gmra.mrb[4].mxu0 %vm636_vm3, %v604_v8 }
 0x395   : > { %2622 = vmatprep.mubr.msk.f32.mxu0 %vm3103_vm2, %v3099_v16 }
 0x43f   : > { %v583_v9 = vpop.f32.mrb[2].mxu0 }
 0x440   : > { %v584_v10 = vadd.f32 %v583_v9, %v500_v42  ;;  %v3463_v11 = vpop.f32.mrb[3].mxu0 }
 0x442   : > { %v616_v12 = vmul.f32 %v613_v45, %v584_v10  ;;  %v595_v13 = vmul.f32 %v592_v59, %v584_v10  ;;  %v611_v18 = vmul.f32 %v608_v55, %v584_v10  ;;  %v589_v22 = vmul.f32 %v584_v10, %v3408_v23 }
 0x444   : > { %621 = vrot.lane.b32.xlu0 %v616_v12, %s3100_s14 }
 0x448   : > { %600 = vrot.lane.b32.xlu0 %v595_v13, %s3100_s14 }
 0x467   : > { %v708_v14 = vpop.f32.mrb[4].mxu0 }
 0x468   : > { %v2609_v15 = vpop.f32.mrb[5].mxu0  ;;  %v712_v17 = vsel %vm636_vm3, %v708_v14, -inf }
 0x469   : > { %713 = vmax.xlane.f32.xlu1 %v712_v17 }
 0x47a   : > { %798 = vrot.lane.b32.xlu1 %v3449_v58, %s3104_s20 }
 0x47e   : > { %796 = vrot.lane.b32.xlu1 %v604_v8, %s3105_s16 }
 0x482   : > { %964 = vrot.lane.b32.xlu1 %v3449_v58, %s3106_s12 }
 0x486   : > { %962 = vrot.lane.b32.xlu1 %v604_v8, %s3107_s10 }
 0x48a   : > { %1127 = vrot.lane.b32.xlu1 %v604_v8, %s3108_s19 }
 0x4b6   : > { %v622_v19 = vpop.permute.xlu0 %621 }
 0x4b7   : > { %v626_v20 = vadd.f32 %v622_v19, %v611_v18 }
 0x4b9   : > { %1310 = vrot.lane.b32.xlu1 %v626_v20, %s3101_s22 }
 0x4ba   : > { %v601_v21 = vpop.permute.xlu0 %600 }
 0x4bb   : > { %v605_v25 = vadd.f32 %v601_v21, %v589_v22 }
 0x4bd   : > { %1473 = vrot.lane.b32.xlu1 %v626_v20, %s3104_s20 }
 0x4c1   : > { %1471 = vrot.lane.b32.xlu1 %v605_v25, %s3105_s16 }
 0x4c5   : > { %1639 = vrot.lane.b32.xlu1 %v626_v20, %s3106_s12 }
 0x4c9   : > { %1637 = vrot.lane.b32.xlu1 %v605_v25, %s3107_s10 }
 0x4cd   : > { %1802 = vrot.lane.b32.xlu1 %v605_v25, %s3108_s19 }
 0x4f6   : > { %v714_v26 = vpop.xlane.xlu1 %713 }
 0x4f7   : > { %v715_v27 = vsub.f32 %v708_v14, %v714_v26 }
 0x4f9   : > { %v716_v28 = vmul.f32 1.442695, %v715_v27 }
 0x4fa   : > { %v799_v23 = vpop.permute.xlu1 %798 }
 0x4fb   : > { %2859 = vpow2.f32 %v716_v28  ;;  %v3533_v28 = vadd.f32 %v3463_v11, %v3437_v43 }
 0x4fe   : > { %v797_v35 = vpop.permute.xlu1 %796 }
 0x502   : > { %v965_v36 = vpop.permute.xlu1 %964 }
 0x505   : > { %v2860_v29 = vpop.eup %2859 }
 0x506   : > { %v718_v34 = vsel %vm636_vm3, %v2860_v29, 0.0  ;;  %v963_v38 = vpop.permute.xlu1 %962 }
 0x507   : > { %719 = vadd.xlane.f32.xlu0 %v718_v34 }
 0x50a   : > { %v1128_v39 = vpop.permute.xlu1 %1127 }
 0x51d   : > { %1129 = vrot.lane.b32.xlu0 %v3449_v58, %s3109_s18 }
 0x521   : > { %1804 = vrot.lane.b32.xlu0 %v626_v20, %s3109_s18 }
 0x52b   : > { %v1311_v41 = vpop.permute.xlu1 %1310 }
 0x52f   : > { %v1474_v44 = vpop.permute.xlu1 %1473 }
 0x533   : > { %v1472_v46 = vpop.permute.xlu1 %1471 }
 0x537   : > { %v1640_v47 = vpop.permute.xlu1 %1639 }
 0x53b   : > { %v1638_v49 = vpop.permute.xlu1 %1637 }
 0x53f   : > { %v1803_v51 = vpop.permute.xlu1 %1802 }
 0x594   : > { %v720_v37 = vpop.xlane.xlu0 %719 }
 0x595   : > { %2861 = vrcp.f32 %v720_v37 }
 0x598   : > { %v1130_v45 = vpop.permute.xlu0 %1129 }
 0x59c   : > { %v1805_v50 = vpop.permute.xlu0 %1804 }
 0x59f   : > { %v2862_v40 = vpop.eup %2861 }
 0x5a0   : > { %v722_v42 = vmul.f32 %v2862_v40, %v2860_v29 }
 0x5a2   : > { %2613 = vmatmul.mubr.msk.f32.vlgmr.msra.gmra.mrb[0].mxu1 %vm636_vm3, %v722_v42 }
 0x5a3   : > { %2616 = vmatpush3.xpose.msk.msra.mxu1 %vm636_vm3, %v799_v23  ;;  %2617 = vmatprep.mubr.msk.f32.mxu1 %vm3103_vm2, %v3099_v16 }
 0x5a4   : > { %2625 = vmatprep.subr.mxu1 %v3099_v16 }
 0x5a6   : > { %2618 = vmatmul.mubr.msk.f32.vlgmr.msra.gmra.mrb[2].mxu1 %vm636_vm3, %v797_v35 }
 0x5a7   : > { %2626 = vmatpush3.xpose.msk.msra.mxu1 %vm636_vm3, %v965_v36  ;;  %2627 = vmatprep.mubr.msk.f32.mxu1 %vm3103_vm2, %v3099_v16 }
 0x5a8   : > { %2635 = vmatprep.subr.mxu1 %v3099_v16 }
 0x5aa   : > { %2628 = vmatmul.mubr.msk.f32.vlgmr.msra.gmra.mrb[4].mxu1 %vm636_vm3, %v963_v38 }
 0x5ab   : > { %2636 = vmatpush3.xpose.msk.msra.mxu1 %vm636_vm3, %v1130_v45  ;;  %2637 = vmatprep.mubr.msk.f32.mxu1 %vm3103_vm2, %v3099_v16 }
 0x5ac   : > { %2645 = vmatprep.subr.mxu1 %v3099_v16 }
 0x5ae   : > { %2638 = vmatmul.mubr.msk.f32.vlgmr.msra.gmra.mrb[6].mxu1 %vm636_vm3, %v1128_v39 }
 0x5af   : > { %2646 = vmatpush3.xpose.msk.msra.mxu1 %vm636_vm3, %v1311_v41  ;;  %2647 = vmatprep.mubr.msk.f32.mxu1 %vm3103_vm2, %v3099_v16 }
 0x5b0   : > { %2655 = vmatprep.subr.mxu1 %v3099_v16 }
 0x5b2   : > { %2648 = vmatmul.mubr.msk.f32.vlgmr.msra.gmra.mrb[8].mxu1 %vm636_vm3, %v605_v25 }
 0x5b3   : > { %2656 = vmatpush3.xpose.msk.msra.mxu1 %vm636_vm3, %v1474_v44  ;;  %2657 = vmatprep.mubr.msk.f32.mxu1 %vm3103_vm2, %v3099_v16 }
 0x5b4   : > { %2665 = vmatprep.subr.mxu1 %v3099_v16 }
 0x5b6   : > { %2658 = vmatmul.mubr.msk.f32.vlgmr.msra.gmra.mrb[10].mxu1 %vm636_vm3, %v1472_v46 }
 0x5b7   : > { %2666 = vmatpush3.xpose.msk.msra.mxu1 %vm636_vm3, %v1640_v47  ;;  %2667 = vmatprep.mubr.msk.f32.mxu1 %vm3103_vm2, %v3099_v16 }
 0x5b8   : > { %2675 = vmatprep.subr.mxu1 %v3099_v16 }
 0x5ba   : > { %2668 = vmatmul.mubr.msk.f32.vlgmr.msra.gmra.mrb[12].mxu1 %vm636_vm3, %v1638_v49 }
 0x5bb   : > { %2676 = vmatpush3.xpose.msk.msra.mxu1 %vm636_vm3, %v1805_v50  ;;  %2677 = vmatprep.mubr.msk.f32.mxu1 %vm3103_vm2, %v3099_v16 }
 0x5be   : > { %2678 = vmatmul.mubr.msk.f32.vlgmr.msra.gmra.mrb[14].mxu1 %vm636_vm3, %v1803_v51 }
 0x675   : > { %v3515_v52 = vpop.f32.mrb[0].mxu1 }
 0x676   : > { %v2614_v53 = vpop.f32.mrb[1].mxu1 }
 0x679   : > { %v870_v54 = vpop.f32.mrb[2].mxu1 }
 0x67a   : > { %v2619_v55 = vpop.f32.mrb[3].mxu1  ;;  %v874_v56 = vsel %vm636_vm3, %v870_v54, -inf }
 0x67b   : > { %875 = vmax.xlane.f32.xlu0 %v874_v56 }
 0x67d   : > { %v1036_v57 = vpop.f32.mrb[4].mxu1 }
 0x67e   : > { %v2629_v58 = vpop.f32.mrb[5].mxu1  ;;  %v1040_v59 = vsel %vm636_vm3, %v1036_v57, -inf }
 0x67f   : > { %1041 = vmax.xlane.f32.xlu1 %v1040_v59 }
 0x681   : > { %v1201_v60 = vpop.f32.mrb[6].mxu1 }
 0x682   : > { %v2639_v61 = vpop.f32.mrb[7].mxu1  ;;  %v1205_v62 = vsel %vm636_vm3, %v1201_v60, -inf }
 0x683   : > { %1206 = vmax.xlane.f32.xlu0 %v1205_v62 }
 0x685   : > { %v1383_v63 = vpop.f32.mrb[8].mxu1 }
 0x686   : > { %v2649_v0 = vpop.f32.mrb[9].mxu1  ;;  %v1387_v1 = vsel %vm636_vm3, %v1383_v63, -inf }
 0x687   : > { %1388 = vmax.xlane.f32.xlu0 %v1387_v1 }
 0x689   : > { %v1545_v3 = vpop.f32.mrb[10].mxu1 }
 0x68a   : > { %v2659_v4 = vpop.f32.mrb[11].mxu1  ;;  %v1549_v5 = vsel %vm636_vm3, %v1545_v3, -inf }
 0x68b   : > { %1550 = vmax.xlane.f32.xlu1 %v1549_v5 }
 0x68d   : > { %v1711_v6 = vpop.f32.mrb[12].mxu1 }
 0x68e   : > { %v2669_v7 = vpop.f32.mrb[13].mxu1  ;;  %v1715_v8 = vsel %vm636_vm3, %v1711_v6, -inf }
 0x68f   : > { %1716 = vmax.xlane.f32.xlu0 %v1715_v8 }
 0x691   : > { %v1876_v9 = vpop.f32.mrb[14].mxu1 }
 0x692   : > { %v2679_v10 = vpop.f32.mrb[15].mxu1  ;;  %v1880_v12 = vsel %vm636_vm3, %v1876_v9, -inf }
 0x69c   : > { %886 = vrot.lane.b32.xlu1 %v3440_v48, %s3105_s16 }
 0x6c0   : > { %1881 = vmax.xlane.f32.xlu1 %v1880_v12 }
 0x6d1   : > { %1216 = vrot.lane.b32.xlu1 %v3440_v48, %s3108_s19 }
 0x708   : > { %v876_v13 = vpop.xlane.xlu0 %875 }
 0x709   : > { %v877_v14 = vsub.f32 %v870_v54, %v876_v13 }
 0x70b   : > { %v878_v15 = vmul.f32 1.442695, %v877_v14 }
 0x70c   : > { %v1042_v17 = vpop.xlane.xlu1 %1041 }
 0x70d   : > { %2863 = vpow2.f32 %v878_v15  ;;  %v1043_v18 = vsub.f32 %v1036_v57, %v1042_v17 }
 0x70f   : > { %v1044_v19 = vmul.f32 1.442695, %v1043_v18 }
 0x710   : > { %v1207_v29 = vpop.xlane.xlu0 %1206 }
 0x711   : > { %2865 = vpow2.f32 %v1044_v19  ;;  %v1208_v34 = vsub.f32 %v1201_v60, %v1207_v29 }
 0x713   : > { %v1209_v36 = vmul.f32 1.442695, %v1208_v34 }
 0x714   : > { %v1389_v23 = vpop.xlane.xlu0 %1388 }
 0x715   : > { %v1390_v35 = vsub.f32 %v1383_v63, %v1389_v23  ;;  %2867 = vpow2.f32 %v1209_v36  ;;  %v1985_v23 = vld [vmem:[%s3381_s11 + $0x18] sm:$0xff] }
 0x717   : > { %v2864_v20 = vpop.eup %2863  ;;  %v1391_v39 = vmul.f32 1.442695, %v1390_v35 }
 0x718   : > { %v1551_v21 = vpop.xlane.xlu1 %1550  ;;  %v880_v22 = vsel %vm636_vm3, %v2864_v20, 0.0 }
 0x719   : > { %881 = vadd.xlane.f32.xlu0 %v880_v22  ;;  %v1552_v37 = vsub.f32 %v1545_v3, %v1551_v21  ;;  %2869 = vpow2.f32 %v1391_v39 }
 0x71b   : > { %v2866_v25 = vpop.eup %2865  ;;  %v1553_v40 = vmul.f32 1.442695, %v1552_v37 }
 0x71c   : > { %v887_v26 = vpop.permute.xlu1 %886  ;;  %v1046_v27 = vsel %vm636_vm3, %v2866_v25, 0.0  ;;  %v1717_v38 = vpop.xlane.xlu0 %1716 }
 0x71d   : > { %2621 = vmatpush3.msra.mxu0 %v887_v26  ;;  %1047 = vadd.xlane.f32.xlu1 %v1046_v27  ;;  %v1718_v41 = vsub.f32 %v1711_v6, %v1717_v38  ;;  %2871 = vpow2.f32 %v1553_v40  ;;  %v1982_v27 = vld [vmem:[%s3381_s11] sm:$0xff] }
 0x71e   : > { %2630 = vmatprep.subr.mxu0 %v3099_v16 }
 0x71f   : > { %v1719_v43 = vmul.f32 1.442695, %v1718_v41  ;;  %v2868_v11 = vpop.eup %2867 }
 0x721   : > { %2873 = vpow2.f32 %v1719_v43 }
 0x723   : > { %v2870_v42 = vpop.eup %2869 }
 0x724   : > { %v1393_v50 = vsel %vm636_vm3, %v2870_v42, 0.0 }
 0x727   : > { %v2872_v45 = vpop.eup %2871 }
 0x728   : > { %v1555_v49 = vsel %vm636_vm3, %v2872_v45, 0.0 }
 0x72b   : > { %v2874_v51 = vpop.eup %2873 }
 0x72c   : > { %v1721_v53 = vsel %vm636_vm3, %v2874_v51, 0.0 }
 0x72e   : > { %1561 = vrot.lane.b32.xlu1 %v3533_v28, %s3105_s16 }
 0x72f   : > { %1051 = vrot.lane.b32.xlu0 %v3440_v48, %s3107_s10  ;;  %v1211_v48 = vsel %vm636_vm3, %v2868_v11, 0.0 }
 0x74d   : > { %v1882_v44 = vpop.xlane.xlu1 %1881 }
 0x74e   : > { %v1883_v46 = vsub.f32 %v1876_v9, %v1882_v44  ;;  %1212 = vadd.xlane.f32.xlu0 %v1211_v48 }
 0x750   : > { %v1884_v47 = vmul.f32 1.442695, %v1883_v46 }
 0x751   : > { %v1217_v56 = vpop.permute.xlu1 %1216 }
 0x752   : > { %2875 = vpow2.f32 %v1884_v47  ;;  %1556 = vadd.xlane.f32.xlu0 %v1555_v49  ;;  %1394 = vadd.xlane.f32.xlu1 %v1393_v50 }
 0x756   : > { %1722 = vadd.xlane.f32.xlu1 %v1721_v53 }
 0x75c   : > { %v2876_v54 = vpop.eup %2875 }
 0x75d   : > { %v1886_v55 = vsel %vm636_vm3, %v2876_v54, 0.0 }
 0x75e   : > { %1887 = vadd.xlane.f32.xlu0 %v1886_v55 }
 0x767   : > { %1891 = vrot.lane.b32.xlu1 %v3533_v28, %s3108_s19 }
 0x774   : > { %1726 = vrot.lane.b32.xlu0 %v3533_v28, %s3107_s10 }
 0x7a6   : > { %v882_v57 = vpop.xlane.xlu0 %881 }
 0x7a7   : > { %2877 = vrcp.f32 %v882_v57  ;;  %v629_v57 = vsub.s32 2, %v3417_v30 }
 0x7aa   : > { %v1048_v58 = vpop.xlane.xlu1 %1047  ;;  %v1052_v61 = vpop.permute.xlu0 %1051 }
 0x7ab   : > { %2879 = vrcp.f32 %v1048_v58  ;;  %v630_v58 = vrot.slane %v3422_v32, %v629_v57 }
 0x7ae   : > { %v1562_v0 = vpop.permute.xlu1 %1561 }
 0x7b1   : > { %v2878_v59 = vpop.eup %2877 }
 0x7b2   : > { %v884_v60 = vmul.f32 %v2878_v59, %v2864_v20  ;;  %v631_v59 = vadd.f32 %v630_v58, %v3391_v2 }
 0x7b4   : > { %2623 = vmatmul.mubr.msk.f32.vlgmr.msra.gmra.mrb[6].mxu0 %vm636_vm3, %v884_v60 }
 0x7b5   : > { %v2880_v62 = vpop.eup %2879  ;;  %2631 = vmatpush3.msra.mxu0 %v1052_v61  ;;  %2632 = vmatprep.mubr.msk.f32.mxu0 %vm3103_vm2, %v3099_v16 }
 0x7b6   : > { %v1050_v63 = vmul.f32 %v2880_v62, %v2866_v25  ;;  %2640 = vmatprep.subr.mxu0 %v3099_v16 }
 0x7b8   : > { %2633 = vmatmul.mubr.msk.f32.vlgmr.msra.gmra.mrb[8].mxu0 %vm636_vm3, %v1050_v63 }
 0x7b9   : > { %2641 = vmatpush3.msra.mxu0 %v1217_v56  ;;  %2642 = vmatprep.mubr.msk.f32.mxu0 %vm3103_vm2, %v3099_v16 }
 0x7ba   : > { %2650 = vmatprep.subr.mxu0 %v3099_v16 }
 0x7db   : > { %v1213_v1 = vpop.xlane.xlu0 %1212 }
 0x7dc   : > { %2881 = vrcp.f32 %v1213_v1 }
 0x7df   : > { %v1395_v3 = vpop.xlane.xlu1 %1394  ;;  %v1557_v4 = vpop.xlane.xlu0 %1556 }
 0x7e0   : > { %2883 = vrcp.f32 %v1395_v3 }
 0x7e1   : > { %2885 = vrcp.f32 %v1557_v4 }
 0x7e3   : > { %v1723_v5 = vpop.xlane.xlu1 %1722 }
 0x7e4   : > { %2887 = vrcp.f32 %v1723_v5 }
 0x7e6   : > { %v2882_v6 = vpop.eup %2881 }
 0x7e7   : > { %v1215_v7 = vmul.f32 %v2882_v6, %v2868_v11  ;;  %v1892_v19 = vpop.permute.xlu1 %1891 }
 0x7e9   : > { %2643 = vmatmul.mubr.msk.f32.vlgmr.msra.gmra.mrb[10].mxu0 %vm636_vm3, %v1215_v7 }
 0x7ea   : > { %2651 = vmatpush3.msra.mxu0 %v3533_v28  ;;  %2652 = vmatprep.mubr.msk.f32.mxu0 %vm3103_vm2, %v3099_v16  ;;  %v2884_v8 = vpop.eup %2883  ;;  %v1983_v28 = vld [vmem:[%s3381_s11 + $0x8] sm:$0xff] }
 0x7eb   : > { %v1888_v9 = vpop.xlane.xlu0 %1887  ;;  %2660 = vmatprep.subr.mxu0 %v3099_v16  ;;  %v1397_v10 = vmul.f32 %v2884_v8, %v2870_v42  ;;  %v2886_v12 = vpop.eup %2885  ;;  %v2734_v29 = vpack.c.bf16 %v1983_v28, %v1982_v27  ;;  %v2095_v27 = vsub.s32 3, %v3417_v30  ;;  %v2101_v28 = vsub.s32 4, %v3417_v30 }
 0x7ec   : > { %2889 = vrcp.f32 %v1888_v9  ;;  %v1559_v13 = vmul.f32 %v2886_v12, %v2872_v45  ;;  %v2105_v12 = vld [vmem:[%s3363_s26] sm:$0xff] }
 0x7ed   : > { %2653 = vmatmul.mubr.msk.f32.vlgmr.msra.gmra.mrb[12].mxu0 %vm636_vm3, %v1397_v10  ;;  %2735 = vmatprep.subr.bf16.mxu1 %v2734_v29 }
 0x7ee   : > { %2661 = vmatpush3.msra.mxu0 %v1562_v0  ;;  %2662 = vmatprep.mubr.msk.f32.mxu0 %vm3103_vm2, %v3099_v16  ;;  %v2888_v15 = vpop.eup %2887 }
 0x7ef   : > { %v1727_v14 = vpop.permute.xlu0 %1726  ;;  %2670 = vmatprep.subr.mxu0 %v3099_v16  ;;  %v1725_v17 = vmul.f32 %v2888_v15, %v2874_v51  ;;  %2737 = vmatpush3.bf16.msra.mxu1 %v2734_v29  ;;  %v2107_v15 = vld [vmem:[%s3363_s26 + $0x10] sm:$0xff]  ;;  %v2096_v29 = vrot.slane %v3422_v32, %v2095_v27 }
 0x7f1   : > { %2663 = vmatmul.mubr.msk.f32.vlgmr.msra.gmra.mrb[14].mxu0 %vm636_vm3, %v1559_v13  ;;  %v2106_v13 = vld [vmem:[%s3363_s26 + $0x8] sm:$0xff] }
 0x7f2   : > { %2671 = vmatpush3.msra.mxu0 %v1727_v14  ;;  %2672 = vmatprep.mubr.msk.f32.mxu0 %vm3103_vm2, %v3099_v16  ;;  %v2742_v14 = vpack.c.bf16 %v2106_v13, %v2105_v12 }
 0x7f3   : > { %2680 = vmatprep.subr.mxu0 %v3099_v16 }
 0x7f5   : > { %2673 = vmatmul.mubr.msk.f32.vlgmr.msra.gmra.mrb[16].mxu0 %vm636_vm3, %v1725_v17  ;;  %v2108_v17 = vld [vmem:[%s3363_s26 + $0x18] sm:$0xff] }
 0x7f6   : > { %v2890_v18 = vpop.eup %2889  ;;  %2681 = vmatpush3.msra.mxu0 %v1892_v19  ;;  %2682 = vmatprep.mubr.msk.f32.mxu0 %vm3103_vm2, %v3099_v16  ;;  %v1984_v16 = vld [vmem:[%s3381_s11 + $0x10] sm:$0xff] }
 0x7f7   : > { %v1890_v20 = vmul.f32 %v2890_v18, %v2876_v54  ;;  %v2738_v36 = vpack.c.bf16 %v1985_v23, %v1984_v16  ;;  %2743 = vmatprep.subr.bf16.mxu0 %v2742_v14  ;;  %v2746_v18 = vpack.c.bf16 %v2108_v17, %v2107_v15  ;;  %v2102_v23 = vrot.slane %v3422_v32, %v2101_v28 }
 0x7f9   : > { %2683 = vmatmul.mubr.msk.f32.vlgmr.msra.gmra.mrb[18].mxu0 %vm636_vm3, %v1890_v20  ;;  %2739 = vmatprep.subr.bf16.mxu1 %v2738_v36 }
 0x7fa   : > { %2741 = vmatpush3.bf16.msra.mxu1 %v2738_v36  ;;  %2745 = vmatpush3.bf16.msra.mxu0 %v2742_v14 }
 0x7fb   : > { %2747 = vmatprep.subr.bf16.mxu0 %v2746_v18 }
 0x7fe   : > { %2749 = vmatpush3.bf16.msra.mxu0 %v2746_v18 }
 0x887   : > { %v958_v21 = vpop.f32.mrb[6].mxu0 }
 0x888   : > { %v2624_v22 = vpop.f32.mrb[7].mxu0  ;;  %1293 = vrot.lane.b32.xlu0 %v958_v21, %s3110_s27 }
 0x88b   : > { %v1123_v25 = vpop.f32.mrb[8].mxu0 }
 0x88c   : > { %1297 = vrot.lane.b32.xlu1 %v1123_v25, %s3111_s8  ;;  %v2634_v26 = vpop.f32.mrb[9].mxu0 }
 0x8bc   : > { %v1288_v34 = vpop.f32.mrb[10].mxu0 }
 0x8bd   : > { %1301 = vrot.lane.b32.xlu1 %v1288_v34, %s3112_s30  ;;  %v2644_v35 = vpop.f32.mrb[11].mxu0 }
 0x8c0   : > { %v1467_v37 = vpop.f32.mrb[12].mxu0 }
 0x8c1   : > { %v2654_v38 = vpop.f32.mrb[13].mxu0 }
 0x8c4   : > { %v1633_v39 = vpop.f32.mrb[14].mxu0 }
 0x8c5   : > { %1968 = vrot.lane.b32.xlu0 %v1633_v39, %s3110_s27  ;;  %v2664_v40 = vpop.f32.mrb[15].mxu0 }
 0x8c8   : > { %v1798_v41 = vpop.f32.mrb[16].mxu0 }
 0x8c9   : > { %1972 = vrot.lane.b32.xlu0 %v1798_v41, %s3111_s8  ;;  %v2674_v43 = vpop.f32.mrb[17].mxu0  ;;  %v2204_v41 = vld [vmem:[%s3386_s13] sm:$0xff] }
 0x8ca   : > { %v2205_v43 = vld [vmem:[%s3386_s13 + $0x8] sm:$0xff] }
 0x8cc   : > { %v1963_v11 = vpop.f32.mrb[18].mxu0 }
 0x8cd   : > { %1976 = vrot.lane.b32.xlu1 %v1963_v11, %s3112_s30  ;;  %v2684_v42 = vpop.f32.mrb[19].mxu0  ;;  %v2750_v11 = vpack.c.bf16 %v2205_v43, %v2204_v41 }
 0x8ce   : > { %v2206_v42 = vld [vmem:[%s3386_s13 + $0x10] sm:$0xff] }
 0x8cf   : > { %2751 = vmatprep.subr.bf16.mxu1 %v2750_v11 }
 0x8fa   : > { %v1294_v44 = vpop.permute.xlu0 %1293 }
 0x8fb   : > { %v1304_v45 = vsel %vm636_vm3, %v3515_v52, %v1294_v44  ;;  %v632_v52 = vadd.f32 %v630_v58, %v3413_v24  ;;  %v2207_v44 = vld [vmem:[%s3386_s13 + $0x18] sm:$0xff] }
 0x8fe   : > { %v1298_v48 = vpop.permute.xlu1 %1297 }
 0x8ff   : > { %v1306_v46 = vsel %vm1305_vm4, %v1304_v45, %v1298_v48  ;;  %v2754_v48 = vpack.c.bf16 %v2207_v44, %v2206_v42  ;;  %v2208_v45 = vld [vmem:[%s3386_s13 + $0x20] sm:$0xff] }
 0x92f   : > { %v1302_v47 = vpop.permute.xlu1 %1301 }
 0x930   : > { %v1308_v49 = vsel %vm1307_vm5, %v1306_v46, %v1302_v47  ;;  %v2209_v46 = vld [vmem:[%s3386_s13 + $0x28] sm:$0xff] }
 0x931   : > { %2693 = vmatprep.mubr.msk.f32.mxu1 %vm449_vm1, %v1308_v49  ;;  %v2758_v47 = vpack.c.bf16 %v2209_v46, %v2208_v45  ;;  %v2210_v49 = vld [vmem:[%s3386_s13 + $0x30] sm:$0xff] }
 0x937   : > { %v1969_v50 = vpop.permute.xlu0 %1968 }
 0x938   : > { %v1979_v53 = vsel %vm636_vm3, %v1467_v37, %v1969_v50  ;;  %v2211_v50 = vld [vmem:[%s3386_s13 + $0x38] sm:$0xff] }
 0x93b   : > { %v1973_v51 = vpop.permute.xlu0 %1972 }
 0x93c   : > { %v1980_v54 = vsel %vm1305_vm4, %v1979_v53, %v1973_v51  ;;  %v2762_v51 = vpack.c.bf16 %v2211_v50, %v2210_v49  ;;  %v2111_v53 = vsub.s32 6, %v3417_v30 }
 0x93f   : > { %v1977_v55 = vpop.permute.xlu1 %1976 }
 0x940   : > { %v1981_v56 = vsel %vm1307_vm5, %v1980_v54, %v1977_v55  ;;  %v2112_v54 = vrot.slane %v3422_v32, %v2111_v53 }
 0x941   : > { %2694 = vmatmul.mubr.msk.f32.vlgmr.msra.gmra.mrb[16].mxu1 %vm449_vm1, %v1981_v56 }
 0x942   : > { %2753 = vmatpush3.bf16.msra.mxu1 %v2750_v11 }
 0x943   : > { %2755 = vmatprep.subr.bf16.mxu1 %v2754_v48 }
 0x946   : > { %2757 = vmatpush3.bf16.msra.mxu1 %v2754_v48 }
 0x947   : > { %2759 = vmatprep.subr.bf16.mxu1 %v2758_v47 }
 0x94a   : > { %2761 = vmatpush3.bf16.msra.mxu1 %v2758_v47 }
 0x94b   : > { %2763 = vmatprep.subr.bf16.mxu1 %v2762_v51 }
 0x94e   : > { %2765 = vmatpush3.bf16.msra.mxu1 %v2762_v51 }
 0xa14   : > { %v2695_v60 = vpop.f32.mrb[16].mxu1 }
 0xa15   : > { %v3588_v61 = vadd.f32 %v2695_v60, %v632_v52  ;;  %v2058_v62 = vpop.f32.mrb[17].mxu1 }
 0xa16   : > { %v3590_v63 = vadd.f32 %v2058_v62, %v631_v59 }
 0xa17   : > { %v2070_v0 = vsel %vm449_vm1, %v3588_v61, 0.0 }
 0xa18   : > { %2071 = vadd.xlane.f32.xlu1 %v2070_v0  ;;  %v2067_v1 = vsel %vm449_vm1, %v3590_v63, 0.0 }
 0xa19   : > { %2068 = vadd.xlane.f32.xlu0 %v2067_v1 }
 0xaa5   : > { %v2072_v3 = vpop.xlane.xlu1 %2071 }
 0xaa6   : > { %v2074_v24 = vmul.f32 0.03125, %v2072_v3  ;;  %v2069_v2 = vpop.xlane.xlu0 %2068 }
 0xaa7   : > { %v2073_v4 = vmul.f32 0.03125, %v2069_v2 }
 0xaa8   : > { %v2076_v5 = vsub.f32 %v3588_v61, %v2074_v24 }
 0xaa9   : > { %v2075_v6 = vsub.f32 %v3590_v63, %v2073_v4 }
 0xaaa   : > { %v2078_v9 = vmul.f32 %v2076_v5, %v2076_v5 }
 0xaab   : > { %v2077_v7 = vmul.f32 %v2075_v6, %v2075_v6 }
 0xaac   : > { %v2082_v10 = vsel %vm449_vm1, %v2078_v9, 0.0 }
 0xaad   : > { %v2079_v8 = vsel %vm449_vm1, %v2077_v7, 0.0 }
 0xaae   : > { %2080 = vadd.xlane.f32.xlu0 %v2079_v8 }
 0xab2   : > { %2083 = vadd.xlane.f32.xlu0 %v2082_v10 }
 0xb3b   : > { %v2081_v19 = vpop.xlane.xlu0 %2080 }
 0xb3c   : > { %v2085_v20 = vmul.f32 0.03125, %v2081_v19 }
 0xb3e   : > { %v2087_v21 = vadd.f32 1e-05, %v2085_v20 }
 0xb3f   : > { %v2084_v22 = vpop.xlane.xlu0 %2083 }
 0xb40   : > { %2891 = vrsqrt.f32 %v2087_v21  ;;  %v2086_v25 = vmul.f32 0.03125, %v2084_v22 }
 0xb42   : > { %v2088_v26 = vadd.f32 1e-05, %v2086_v25 }
 0xb44   : > { %2893 = vrsqrt.f32 %v2088_v26 }
 0xb4a   : > { %v2892_v34 = vpop.eup %2891 }
 0xb4b   : > { %v2091_v16 = vmul.f32 %v2892_v34, %v2075_v6 }
 0xb4d   : > { %v2097_v35 = vmul.f32 %v2096_v29, %v2091_v16 }
 0xb4e   : > { %v2894_v36 = vpop.eup %2893 }
 0xb4f   : > { %v2092_v37 = vmul.f32 %v2894_v36, %v2076_v5  ;;  %v2103_v38 = vadd.f32 %v2102_v23, %v2097_v35  ;;  %v2214_v5 = vsub.s32 5, %v3417_v30 }
 0xb51   : > { %v2098_v39 = vmul.f32 %v2096_v29, %v2092_v37  ;;  %2704 = vmatprep.mubr.msk.f32.mxu0 %vm449_vm1, %v2103_v38  ;;  %v2215_v6 = vrot.slane %v3422_v32, %v2214_v5 }
 0xb53   : > { %v2104_v40 = vadd.f32 %v2102_v23, %v2098_v39 }
 0xb55   : > { %2705 = vmatmul.mubr.msk.f32.vlgmr.msra.gmra.mrb[20].mxu0 %vm449_vm1, %v2104_v40 }
 0xc28   : > { %v2706_v55 = vpop.f32.mrb[20].mxu0 }
 0xc29   : > { %v2191_v56 = vadd.f32 %v2706_v55, %v2112_v54  ;;  %v2185_v57 = vpop.f32.mrb[21].mxu0 }
 0xc2a   : > { %v2186_v58 = vadd.f32 %v2185_v57, %v2112_v54 }
 0xc2b   : > { %v2197_v52 = vmul.f32 0.70710677, %v2191_v56  ;;  %v2195_v24 = vmul.f32 0.5, %v2191_v56 }
 0xc2c   : > { %v2196_v59 = vmul.f32 0.70710677, %v2186_v58  ;;  %v2194_v1 = vmul.f32 0.5, %v2186_v58 }
 0xc2d   : > { %2895 = verf.f32 %v2197_v52 }
 0xc2e   : > { %2897 = verf.f32 %v2196_v59 }
 0xc37   : > { %v2896_v60 = vpop.eup %2895 }
 0xc38   : > { %v2898_v62 = vpop.eup %2897  ;;  %v2201_v0 = vadd.f32 1.0, %v2896_v60 }
 0xc39   : > { %v2200_v3 = vadd.f32 1.0, %v2898_v62 }
 0xc3a   : > { %v2203_v4 = vmul.f32 %v2201_v0, %v2195_v24 }
 0xc3b   : > { %v2202_v2 = vmul.f32 %v2200_v3, %v2194_v1 }
 0xc3d   : > { %2723 = vmatprep.mubr.msk.f32.mxu1 %vm2216_vm6, %v2202_v2 }
 0xc3e   : > { %2724 = vmatmul.mubr.msk.f32.vlgmr.msra.gmra.mrb[18].mxu1 %vm2216_vm6, %v2203_v4 }
 0xd0f   : > { %2303 = sbr.rel (%p2540_p0) target bundleno = 3352 (0xd18), region = 76 }
 0xd11   : > { %v2725_v7 = vpop.f32.mrb[18].mxu1 }
 0xd12   : > { %v2295_v8 = vadd.f32 %v2725_v7, %v2215_v6  ;;  %v2289_v9 = vpop.f32.mrb[19].mxu1 }
 0xd13   : > { %v2290_v10 = vadd.f32 %v2289_v9, %v2215_v6 }
 0xd14   : > { %v2299_v12 = vadd.f32 %v2295_v8, %v3588_v61 }
 0xd15   : > { %v2298_v13 = vadd.f32 %v2290_v10, %v3590_v63 }
 0xd16   : > { %2305 = vst.msk [vmem:[#allocation9 + $0x8] sm:$0xff] %vm449_vm1, %v2299_v12 }
 0xd17   : > { %2304 = vst.msk [vmem:[#allocation9] sm:$0xff] %vm449_vm1, %v2298_v13 }
 0xd18 PF: > { %p2541_p8 = scmp.ne.s32.totalorder %s3179_s9, 1 }
 0xd19   : > { %v2311_v32 = vsel (!%p2541_p8), %vm449_vm1, %v2298_v13, 0.0  ;;  %v2314_v14 = vsel (!%p2541_p8), %vm449_vm1, %v2299_v12, 0.0  ;;  %v2310_v23 = vld [vmem:[%s3680_s2] sm:$0x3] (!%p2541_p8) }
 0xd1a   : > { %2309 = sbr.rel (%p2541_p8) target bundleno = 3671 (0xe57), region = 80  ;;  %2312 = vadd.xlane.f32.xlu0 (!%p2541_p8), %v2311_v32  ;;  %v2340_v35 = vrot.slane (!%p2541_p8), %v2310_v23, %v479_v31  ;;  %v2346_v38 = vrot.slane (!%p2541_p8), %v2310_v23, %v485_v33 }
 0xd1e   : > { %2315 = vadd.xlane.f32.xlu0 (!%p2541_p8), %v2314_v14 }
 0xda7   : > { %v2313_v61 = vpop.xlane.xlu0 %2312 }
 0xda8   : > { %v2317_v15 = vmul.f32 0.03125, %v2313_v61 }
 0xdaa   : > { %v2319_v63 = vsub.f32 %v2298_v13, %v2317_v15 }
 0xdab   : > { %v2316_v17 = vpop.xlane.xlu0 %2315 }
 0xdac   : > { %v2318_v18 = vmul.f32 0.03125, %v2316_v17  ;;  %v2321_v19 = vmul.f32 %v2319_v63, %v2319_v63 }
 0xdae   : > { %v2320_v20 = vsub.f32 %v2299_v12, %v2318_v18  ;;  %v2323_v21 = vsel %vm449_vm1, %v2321_v19, 0.0 }
 0xdaf   : > { %2324 = vadd.xlane.f32.xlu1 %v2323_v21 }
 0xdb0   : > { %v2322_v22 = vmul.f32 %v2320_v20, %v2320_v20 }
 0xdb2   : > { %v2326_v25 = vsel %vm449_vm1, %v2322_v22, 0.0 }
 0xdb3   : > { %2327 = vadd.xlane.f32.xlu1 %v2326_v25 }
 0xe3c   : > { %v2325_v26 = vpop.xlane.xlu1 %2324 }
 0xe3d   : > { %v2329_v27 = vmul.f32 0.03125, %v2325_v26 }
 0xe3f   : > { %v2331_v28 = vadd.f32 1e-05, %v2329_v27 }
 0xe40   : > { %v2328_v29 = vpop.xlane.xlu1 %2327 }
 0xe41   : > { %2899 = vrsqrt.f32 %v2331_v28  ;;  %v2330_v34 = vmul.f32 0.03125, %v2328_v29 }
 0xe43   : > { %v2332_v16 = vadd.f32 1e-05, %v2330_v34 }
 0xe45   : > { %2901 = vrsqrt.f32 %v2332_v16 }
 0xe4b   : > { %v2900_v36 = vpop.eup %2899 }
 0xe4c   : > { %v2335_v37 = vmul.f32 %v2900_v36, %v2319_v63 }
 0xe4e   : > { %v2341_v39 = vmul.f32 %v2340_v35, %v2335_v37 }
 0xe4f   : > { %v2902_v40 = vpop.eup %2901 }
 0xe50   : > { %v2347_v41 = vadd.f32 %v2346_v38, %v2341_v39  ;;  %v2336_v43 = vmul.f32 %v2902_v40, %v2320_v20 }
 0xe52   : > { %2349 = vst.msk [vmem:[#allocation9] sm:$0xff] %vm449_vm1, %v2347_v41  ;;  %v2342_v11 = vmul.f32 %v2340_v35, %v2336_v43 }
 0xe54   : > { %v2348_v42 = vadd.f32 %v2346_v38, %v2342_v11 }
 0xe56   : > { %2350 = vst.msk [vmem:[#allocation9 + $0x8] sm:$0xff] %vm449_vm1, %v2348_v42 }
 0xe57 PF: > { %p2801_p2 = scmp.eq.s32.totalorder %s3179_s9, 1  ;;  %s3113_s23 = smov [#allocation9]  }
 0xe58   : > { %s2357_s11 = sshll.u32 %s3113_s23, 4  ;;  %s2358_s11 = int_to_ptr.vmem [resolvable:$true] %s2357_s11 }
 0xe59   : > { %s3019_s15 = scalar_lea.vmem %s2358_s11, 256  ;;  %p3026_p7 = scmp.lt.s32.totalorder %s2358_s11, %s2358_s11 }
 0xe5a   : > { %p3020_p4 = scmp.ne.s32.totalorder %s2358_s11, %s3019_s15  ;;  %p3027_p13 = scmp.lt.s32.totalorder %s3019_s15, %s3019_s15 }
 0xe5c   : > { %p3021_p11 = pnand %p3020_p4, %p2801_p2  ;;  %p3028_p5 = por %p3027_p13, %p3026_p7 }
 0xe5e   : > { %p3022_p12 = pneg %p3021_p11 }
 0xe60   : > { %p3029_p10 = pnand %p3028_p5, %p3022_p12 }
 0xe62   : > { %3032 = shalt.err (!%p3029_p10)
}
 0xe63   : > { %s3719_s21 = sld [smem:[#allocation16_spill]] }
 0xe69   : > { %s3033_s14 = scalar_lea.hbm %s3719_s21, 256 }
 0xe6a   : > { %p3034_p1 = scmp.ne.s32.totalorder %s3719_s21, %s3033_s14  ;;  %p3039_p6 = scmp.lt.u32.totalorder %s3033_s14, %s3719_s21 }
 0xe6c   : > { %p3035_p9 = pnand %p3034_p1, %p2801_p2 }
 0xe6e   : > { %p3036_p3 = pneg %p3035_p9 }
 0xe70   : > { %p3041_p0 = pnand %p3039_p6, %p3036_p3 }
 0xe72   : > { %3044 = shalt.err (!%p3041_p0)
}
 0xe73   : > { %s3114_s12 = smov 128  }
 0xe74   : > { %2779 = dma.vmem_to_hbm [thread:$0]  (%p2801_p2), %s2358_s11, 256, %s3719_s21, [#allocation4], %s3114_s12, %s3114_s12, %s3110_s27  }
 0xe75   : > { %3074 = dma.done.wait (%p2801_p2), [#allocation4], 256  }
 0xe76   : > { %3076 = vsyncadd (%p2801_p2), [#allocation4], 4294967040 }
 0xe77 PF: > { %s3720_s30 = sld [smem:[#allocation14_spill]]  ;;  %s3721_s18 = sld [smem:[#allocation15_spill]] }
 0xe78   : > { %s3722_s27 = smov %s3083_s28  ;;  %s3723_s28 = smov %s3087_s29 }
 0xe7d   : > { %p18_p8 = scmp.ge.s32.totalorder %s3720_s30, 4   ;;  %s3724_s29 = smov %s3721_s18 }
 0xe7f   :  { %20 = sbr.rel (!%p18_p8) target bundleno = 6 (0x6), region = 128 }
 0xe86   :  { %2373 = vsyncpa [#allocation3], 1 }
 0xe87   :  { %2375 = vsyncpa [#allocation3 + $0x1], 1 }
 0xe88   :  { %2376 = vsyncpa [#allocation6], 1 }
 0xe89   :  { %2377 = vsyncpa [#allocation4], 1 }
 0xe8a   :  { %2379 = vsyncpa [#allocation4 + $0x1], 1 }

</bundles_post_ra>
